<compile_context>
chip_gen: v5e
topology: v5e:2x2
jax: 0.10.0
libtpu: 0.0.40
codegen_flags: <defaults>
</compile_context>

<pallas_src>
import functools

import jax
import jax.numpy as jnp
from jax.experimental import pallas as pl
from jax.experimental.pallas import tpu as pltpu


# --------------------------------------------------------------------------- #
# Kernel
# --------------------------------------------------------------------------- #
def _mha_kernel(x_ref, wq_ref, wk_ref, wv_ref, bq_ref, bk_ref, bv_ref,
                wo_ref, bo_ref, o_ref, acc_ref, og_ref, *,
                n_groups, heads_per_group, head_dim, n_valid):
    """One grid step processes a block of `Bb` full sequences.

    x_ref:         (Bb, Np, D)       input block, compute dtype
    wq/wk/wv_ref:  (G, D, gd)        head-group-major projection weights
                                     (softmax scale folded into Wq/bq)
    bq/bk/bv_ref:  (G, 1, gd)        f32 biases
    wo_ref:        (G, gd, D)        head-group-major output projection
    bo_ref:        (1, D)            f32
    o_ref:         (Bb, Np, D)       output block (original input dtype)
    acc_ref:       VMEM (Bb*Np, D)   f32 output-projection accumulator
    og_ref:        VMEM (Bb*Np, gd)  compute-dtype per-group attention output
    """
    Bb, Np, D = x_ref.shape
    d = head_dim
    cdt = x_ref.dtype

    # Leading-axis merge; layout-preserving because Np % sublane == 0.
    xf = x_ref[...].reshape(Bb * Np, D)
    acc_ref[...] = jnp.zeros_like(acc_ref)

    # Hoisted padded-key mask: built once, broadcast inside the head loop.
    key_ok = None
    if n_valid < Np:
        key_ok = jax.lax.broadcasted_iota(jnp.int32, (1, 1, Np), 2) < n_valid

    def group_body(gi, carry):
        # Full-width projections for this head group: (Bb*Np, D) @ (D, gd).
        qg = (jnp.dot(xf, wq_ref[gi], preferred_element_type=jnp.float32)
              + bq_ref[gi]).astype(cdt)
        kg = (jnp.dot(xf, wk_ref[gi], preferred_element_type=jnp.float32)
              + bk_ref[gi]).astype(cdt)
        vg = (jnp.dot(xf, wv_ref[gi], preferred_element_type=jnp.float32)
              + bv_ref[gi]).astype(cdt)

        for j in range(heads_per_group):        # static, d-aligned lane slices
            lo = j * d
            qh = qg[:, lo:lo + d].reshape(Bb, Np, d)
            kh = kg[:, lo:lo + d].reshape(Bb, Np, d)
            vh = vg[:, lo:lo + d].reshape(Bb, Np, d)

            # Scores (scale already folded into Wq/bq), f32 softmax.
            s = jnp.einsum('bqd,bkd->bqk', qh, kh,
                           preferred_element_type=jnp.float32)
            if key_ok is not None:
                s = jnp.where(key_ok, s, -1e30)   # finite sentinel, no NaN risk
            s = s - jnp.max(s, axis=-1, keepdims=True)
            p = jnp.exp(s)
            attn = (p * pl.reciprocal(jnp.sum(p, axis=-1, keepdims=True),
                                      approx=True)).astype(cdt)
            oh = jnp.einsum('bqk,bkd->bqd', attn, vh,
                            preferred_element_type=jnp.float32)
            og_ref[:, lo:lo + d] = oh.reshape(Bb * Np, d).astype(og_ref.dtype)

        # Output projection per GROUP: contraction K = gd (full MXU width) and
        # a single accumulator read-modify-write per group.
        acc_ref[...] += jnp.dot(og_ref[...], wo_ref[gi],
                                preferred_element_type=jnp.float32)
        return carry

    if n_groups == 1:
        group_body(0, None)
    else:
        jax.lax.fori_loop(0, n_groups, group_body, None)

    y = acc_ref[...] + bo_ref[...]
    o_ref[...] = y.reshape(Bb, Np, D).astype(o_ref.dtype)


# --------------------------------------------------------------------------- #
# Parameter packing (done once, at model-load time)
# --------------------------------------------------------------------------- #
def _pick_heads_per_group(heads, head_dim, lane_target=256):
    """Smallest head-group size whose packed width g*d fills the MXU lanes."""
    for g in range(1, heads + 1):
        if heads % g == 0 and g * head_dim >= lane_target:
            return g
    return heads


def pack_mha_params(w_qkv, b_qkv, w_out, b_out, *, heads,
                    heads_per_group=None, compute_dtype=None):
    """Repack the module parameters head-group major with the softmax scale
    folded into the Q projection.  Weights stored as (in_features, out_features):
    w_qkv (D, 3D), b_qkv (1, 3D), w_out (D, D), b_out (1, D)."""
    D = w_qkv.shape[0]
    assert w_qkv.shape == (D, 3 * D) and w_out.shape == (D, D)
    assert D % heads == 0
    d = D // heads
    g = heads_per_group or _pick_heads_per_group(heads, d)
    assert heads % g == 0
    G = heads // g
    gd = g * d
    cdt = jnp.dtype(compute_dtype or w_qkv.dtype)
    scale = (D / heads) ** (-0.5)

    def grp_w(w):                                  # (D, D) -> (G, D, gd)
        return jnp.transpose(w.reshape(D, G, gd), (1, 0, 2)).astype(cdt)

    def grp_b(b):                                  # (D,) -> (G, 1, gd), keep f32
        return b.reshape(G, 1, gd).astype(jnp.float32)

    bqkv = b_qkv.reshape(3 * D)
    return dict(
        wq=grp_w(w_qkv[:, 0 * D:1 * D] * scale),
        wk=grp_w(w_qkv[:, 1 * D:2 * D]),
        wv=grp_w(w_qkv[:, 2 * D:3 * D]),
        bq=grp_b(bqkv[0 * D:1 * D] * scale),
        bk=grp_b(bqkv[1 * D:2 * D]),
        bv=grp_b(bqkv[2 * D:3 * D]),
        wo=w_out.reshape(G, gd, D).astype(cdt),
        bo=b_out.reshape(1, D).astype(jnp.float32),
        dim=D, heads=heads, head_dim=d, heads_per_group=g, n_groups=G,
        compute_dtype=cdt,
    )


# --------------------------------------------------------------------------- #
# Block / VMEM budget selection
# --------------------------------------------------------------------------- #
_SUBLANE = {4: 8, 2: 16, 1: 32}   # sublane tile by itemsize


def _vmem_budget_bytes():
    """~75% of physical VMEM (generation-aware), capped at 100 MiB."""
    try:
        cap = pltpu.get_tpu_info().vmem_capacity_bytes
    except Exception:
        cap = 64 * 1024 * 1024            # v7x per-core size: conservative floor
    return min(int(cap) * 3 // 4, 100 * 1024 * 1024)


def _vmem_estimate(bb, Np, D, gd, itemsize):
    rows = bb * Np
    io = 2 * 2 * rows * D * itemsize      # double-buffered x and out blocks
    wts = 4 * D * D * itemsize            # single-buffered Wq/Wk/Wv/Wout slabs
    acc = rows * D * 4                    # f32 accumulator scratch
    og = rows * gd * itemsize             # group-output gather scratch
    attn = 3 * bb * Np * Np * 4           # s / p / attn f32 temporaries
    proj = 3 * rows * gd * 4              # qg / kg / vg f32 temporaries
    return io + wts + acc + og + attn + proj


def _pick_block_b(B, Np, D, gd, itemsize, budget, target_rows=512):
    divisors = [bb for bb in range(1, B + 1) if B % bb == 0]
    if B > 1:   # hard: >= 2 grid steps so v7x's 2 TCs / megacore both get work
        divisors = [bb for bb in divisors if B // bb >= 2]
    fitting = [bb for bb in divisors
               if _vmem_estimate(bb, Np, D, gd, itemsize) <= budget]
    if not fitting:
        return divisors[0]
    for bb in fitting:                    # smallest block hitting the MXU row target
        if bb * Np >= target_rows:
            return bb
    return fitting[-1]                    # else the largest block that fits


# --------------------------------------------------------------------------- #
# Wrapper
# --------------------------------------------------------------------------- #
def mha_pallas(x, params, *, block_b=None):
    """x: (B, N, D); `params` from pack_mha_params.  Returns (B, N, D),
    matching the PyTorch module's mask=None forward."""
    B, N, D = x.shape
    assert D == params['dim']
    cdt = params['compute_dtype']
    G = params['n_groups']
    g = params['heads_per_group']
    d = params['head_dim']
    gd = g * d
    out_dtype = x.dtype

    # Pad the sequence to the compute dtype's sublane tile so in-kernel
    # (Bb, Np, D) <-> (Bb*Np, D) reshapes are layout-preserving.
    sub = _SUBLANE[jnp.dtype(cdt).itemsize]
    Np = ((N + sub - 1) // sub) * sub
    x_c = x.astype(cdt)
    x_p = jnp.pad(x_c, ((0, 0), (0, Np - N), (0, 0))) if Np != N else x_c

    itemsize = jnp.dtype(cdt).itemsize
    budget = _vmem_budget_bytes()
    if block_b is None:
        block_b = _pick_block_b(B, Np, D, gd, itemsize, budget)
    assert B % block_b == 0
    grid = (B // block_b,)

    kernel = functools.partial(_mha_kernel, n_groups=G, heads_per_group=g,
                               head_dim=d, n_valid=N)
    args = (x_p, params['wq'], params['wk'], params['wv'],
            params['bq'], params['bk'], params['bv'],
            params['wo'], params['bo'])

    def run(single_buffer_weights):
        wmode = ({'pipeline_mode': pl.Buffered(1)}
                 if single_buffer_weights else {})
        c3 = lambda i: (0, 0, 0)
        in_specs = [
            pl.BlockSpec((block_b, Np, D), lambda i: (i, 0, 0)),   # x block
            pl.BlockSpec((G, D, gd), c3, **wmode),                 # Wq (group-major)
            pl.BlockSpec((G, D, gd), c3, **wmode),                 # Wk
            pl.BlockSpec((G, D, gd), c3, **wmode),                 # Wv
            pl.BlockSpec((G, 1, gd), c3, **wmode),                 # bq
            pl.BlockSpec((G, 1, gd), c3, **wmode),                 # bk
            pl.BlockSpec((G, 1, gd), c3, **wmode),                 # bv
            pl.BlockSpec((G, gd, D), c3, **wmode),                 # Wout (group-major)
            pl.BlockSpec((1, D), lambda i: (0, 0), **wmode),       # bout
        ]
        out_specs = pl.BlockSpec((block_b, Np, D), lambda i: (i, 0, 0))
        fn = pl.pallas_call(
            kernel,
            out_shape=jax.ShapeDtypeStruct((B, Np, D), out_dtype),
            grid_spec=pltpu.PrefetchScalarGridSpec(
                num_scalar_prefetch=0,
                grid=grid,
                in_specs=in_specs,
                out_specs=out_specs,
                scratch_shapes=[
                    pltpu.VMEM((block_b * Np, D), jnp.float32),    # accumulator
                    pltpu.VMEM((block_b * Np, gd), cdt),           # group output
                ]),
            compiler_params=pltpu.CompilerParams(
                dimension_semantics=("parallel",),
                vmem_limit_bytes=budget),
        )
        return fn(*args)

    try:
        out = jax.block_until_ready(run(True))
    except Exception:
        # Fallback for JAX builds that reject single-buffered (Buffered(1))
        # constant-index weight inputs.
        out = run(False)

    return out[:, :N, :] if Np != N else out


# --------------------------------------------------------------------------- #
# Pure-JAX reference (mirrors the PyTorch forward, mask=None)
# --------------------------------------------------------------------------- #
def mha_reference(x, w_qkv, b_qkv, w_out, b_out, *, heads):
    B, N, D = x.shape
    d = D // heads
    scale = (D / heads) ** (-0.5)
    qkv = x @ w_qkv + b_qkv                       # (B, N, 3D)
    q, k, v = jnp.split(qkv, 3, axis=-1)

    def split_heads(t):                           # 'b n (h d) -> b h n d'
        return t.reshape(B, N, heads, d).transpose(0, 2, 1, 3)

    q, k, v = map(split_heads, (q, k, v))
    dots = jnp.einsum('bhid,bhjd->bhij', q, k) * scale
    attn = jax.nn.softmax(dots, axis=-1)
    out = jnp.einsum('bhij,bhjd->bhid', attn, v)
    out = out.transpose(0, 2, 1, 3).reshape(B, N, D)   # 'b h n d -> b n (h d)'
    return out @ w_out + b_out


# --------------------------------------------------------------------------- #
# Self-test
# --------------------------------------------------------------------------- #
if __name__ == "__main__":
    key = jax.random.PRNGKey(0)
    kx1, kx2, kx3, kp1, kp2 = jax.random.split(key, 5)

    def make_params(k, D):
        kw1, kb1, kw2, kb2 = jax.random.split(k, 4)
        w_qkv = jax.random.normal(kw1, (D, 3 * D), dtype=jnp.float32) * 0.05
        b_qkv = jax.random.normal(kb1, (1, 3 * D), dtype=jnp.float32) * 0.05
        w_out = jax.random.normal(kw2, (D, D), dtype=jnp.float32) * 0.05
        b_out = jax.random.normal(kb2, (1, D), dtype=jnp.float32) * 0.05
        return w_qkv, b_qkv, w_out, b_out

    # Case 1: B=2, N=8, D=64, heads=8 -> single head group, no padding, f32.
    B, N, D, HEADS = 2, 8, 64, 8
    w_qkv, b_qkv, w_out, b_out = make_params(kp1, D)
    x = jax.random.normal(kx1, (B, N, D), dtype=jnp.float32)
    packed = pack_mha_params(w_qkv, b_qkv, w_out, b_out, heads=HEADS)
    y = jax.block_until_ready(mha_pallas(x, packed))
    y_ref = mha_reference(x, w_qkv, b_qkv, w_out, b_out, heads=HEADS)
    assert y.shape == (B, N, D)
    assert jnp.allclose(y, y_ref, atol=2e-3, rtol=2e-3), "mismatch (N=8, D=64)"

    # Case 2: N=10 exercises the padded / masked-key path.
    N2 = 10
    x2 = jax.random.normal(kx2, (B, N2, D), dtype=jnp.float32)
    y2 = jax.block_until_ready(mha_pallas(x2, packed))
    y2_ref = mha_reference(x2, w_qkv, b_qkv, w_out, b_out, heads=HEADS)
    assert y2.shape == (B, N2, D)
    assert jnp.allclose(y2, y2_ref, atol=2e-3, rtol=2e-3), "mismatch (N=10, D=64)"

    # Case 3: D=512, heads=8 (d=64) -> 2 head groups of width 256: exercises the
    # group-packed projections and the fori_loop-over-groups path, f32.
    D3 = 512
    w_qkv3, b_qkv3, w_out3, b_out3 = make_params(kp2, D3)
    x3 = jax.random.normal(kx3, (B, N2, D3), dtype=jnp.float32)
    packed3 = pack_mha_params(w_qkv3, b_qkv3, w_out3, b_out3, heads=HEADS)
    assert packed3['n_groups'] == 2 and packed3['heads_per_group'] == 4
    y3 = jax.block_until_ready(mha_pallas(x3, packed3))
    y3_ref = mha_reference(x3, w_qkv3, b_qkv3, w_out3, b_out3, heads=HEADS)
    assert y3.shape == (B, N2, D3)
    assert jnp.allclose(y3, y3_ref, atol=5e-3, rtol=5e-3), "mismatch (N=10, D=512)"

    # Case 4: bf16 compute path (v6e/v7x MXU rate), f32 accumulation/softmax,
    # sublane-16 padding.  Loose tolerance vs. the f32 reference.
    packed3_bf16 = pack_mha_params(w_qkv3, b_qkv3, w_out3, b_out3, heads=HEADS,
                                   compute_dtype=jnp.bfloat16)
    y4 = jax.block_until_ready(mha_pallas(x3, packed3_bf16))
    assert y4.shape == (B, N2, D3)
    assert jnp.allclose(y4, y3_ref, atol=1.5e-1, rtol=1e-1), "mismatch (bf16)"

    print("KERNEL_OK")
</pallas_src>

<mosaic_0001>
module attributes {stable_mosaic.version = 11 : i64} {
  func.func @_mha_kernel(%arg0: i32, %arg1: memref<1x8x64xf32, #tpu.memory_space<vmem>>, %arg2: memref<1x64x64xf32, #tpu.memory_space<vmem>>, %arg3: memref<1x64x64xf32, #tpu.memory_space<vmem>>, %arg4: memref<1x64x64xf32, #tpu.memory_space<vmem>>, %arg5: memref<1x1x64xf32, #tpu.memory_space<vmem>>, %arg6: memref<1x1x64xf32, #tpu.memory_space<vmem>>, %arg7: memref<1x1x64xf32, #tpu.memory_space<vmem>>, %arg8: memref<1x64x64xf32, #tpu.memory_space<vmem>>, %arg9: memref<1x64xf32, #tpu.memory_space<vmem>>, %arg10: memref<1x8x64xf32, #tpu.memory_space<vmem>>, %arg11: memref<8x64xf32, #tpu.memory_space<vmem>>, %arg12: memref<8x64xf32, #tpu.memory_space<vmem>>) attributes {dimension_semantics = [#tpu.dimension_semantics<parallel>], iteration_bounds = array<i64: 2>, scalar_prefetch = 0 : i64, scratch_operands = 2 : i64, tpu.core_type = #tpu.core_type<tc>, window_params = [{transform_indices = @transform_0, window_bounds = array<i64: 1, 8, 64>}, {pipeline_mode = #tpu.pipeline_mode<synchronous>, transform_indices = @transform_1, window_bounds = array<i64: 1, 64, 64>}, {pipeline_mode = #tpu.pipeline_mode<synchronous>, transform_indices = @transform_2, window_bounds = array<i64: 1, 64, 64>}, {pipeline_mode = #tpu.pipeline_mode<synchronous>, transform_indices = @transform_3, window_bounds = array<i64: 1, 64, 64>}, {pipeline_mode = #tpu.pipeline_mode<synchronous>, transform_indices = @transform_4, window_bounds = array<i64: 1, 1, 64>}, {pipeline_mode = #tpu.pipeline_mode<synchronous>, transform_indices = @transform_5, window_bounds = array<i64: 1, 1, 64>}, {pipeline_mode = #tpu.pipeline_mode<synchronous>, transform_indices = @transform_6, window_bounds = array<i64: 1, 1, 64>}, {pipeline_mode = #tpu.pipeline_mode<synchronous>, transform_indices = @transform_7, window_bounds = array<i64: 1, 64, 64>}, {pipeline_mode = #tpu.pipeline_mode<synchronous>, transform_indices = @transform_8, window_bounds = array<i64: 1, 64>}, {transform_indices = @transform_9, window_bounds = array<i64: 1, 8, 64>}]} {
    %c0 = arith.constant 0 : index
    %c0_0 = arith.constant 0 : index
    %c0_1 = arith.constant 0 : index
    %0 = vector.load %arg1[%c0, %c0_0, %c0_1] : memref<1x8x64xf32, #tpu.memory_space<vmem>>, vector<1x8x64xf32>
    %1 = vector.shape_cast %0 : vector<1x8x64xf32> to vector<8x64xf32>
    %cst = arith.constant 0.000000e+00 : f32
    %2 = vector.broadcast %cst : f32 to vector<8x64xf32>
    %c0_2 = arith.constant 0 : index
    %c0_3 = arith.constant 0 : index
    %3 = vector.load %arg11[%c0_2, %c0_3] : memref<8x64xf32, #tpu.memory_space<vmem>>, vector<8x64xf32>
    tpu.vector_store %arg11[%c0_2, %c0_3], %2 {strides = array<i32>} : memref<8x64xf32, #tpu.memory_space<vmem>>, vector<8x64xf32>,
    %c0_4 = arith.constant 0 : index
    %c0_5 = arith.constant 0 : index
    %c0_6 = arith.constant 0 : index
    %4 = vector.load %arg2[%c0_4, %c0_5, %c0_6] : memref<1x64x64xf32, #tpu.memory_space<vmem>>, vector<1x64x64xf32>
    %5 = vector.shape_cast %4 : vector<1x64x64xf32> to vector<64x64xf32>
    %cst_7 = arith.constant dense<0.000000e+00> : vector<8x64xf32>
    %6 = tpu.matmul %1, %5, %cst_7 {dimension_numbers = #tpu.dot_dimension_numbers<[1], [0], [0], [1], [0, 0, 1, 1], [], []>} : vector<8x64xf32>, vector<64x64xf32>, vector<8x64xf32> -> vector<8x64xf32>
    %c0_8 = arith.constant 0 : index
    %c0_9 = arith.constant 0 : index
    %c0_10 = arith.constant 0 : index
    %7 = vector.load %arg5[%c0_8, %c0_9, %c0_10] : memref<1x1x64xf32, #tpu.memory_space<vmem>>, vector<1x1x64xf32>
    %8 = vector.shape_cast %7 : vector<1x1x64xf32> to vector<1x64xf32>
    %9 = vector.broadcast %8 : vector<1x64xf32> to vector<8x64xf32>
    %10 = arith.addf %6, %9 : vector<8x64xf32>
    %c0_11 = arith.constant 0 : index
    %c0_12 = arith.constant 0 : index
    %c0_13 = arith.constant 0 : index
    %11 = vector.load %arg3[%c0_11, %c0_12, %c0_13] : memref<1x64x64xf32, #tpu.memory_space<vmem>>, vector<1x64x64xf32>
    %12 = vector.shape_cast %11 : vector<1x64x64xf32> to vector<64x64xf32>
    %cst_14 = arith.constant dense<0.000000e+00> : vector<8x64xf32>
    %13 = tpu.matmul %1, %12, %cst_14 {dimension_numbers = #tpu.dot_dimension_numbers<[1], [0], [0], [1], [0, 0, 1, 1], [], []>} : vector<8x64xf32>, vector<64x64xf32>, vector<8x64xf32> -> vector<8x64xf32>
    %c0_15 = arith.constant 0 : index
    %c0_16 = arith.constant 0 : index
    %c0_17 = arith.constant 0 : index
    %14 = vector.load %arg6[%c0_15, %c0_16, %c0_17] : memref<1x1x64xf32, #tpu.memory_space<vmem>>, vector<1x1x64xf32>
    %15 = vector.shape_cast %14 : vector<1x1x64xf32> to vector<1x64xf32>
    %16 = vector.broadcast %15 : vector<1x64xf32> to vector<8x64xf32>
    %17 = arith.addf %13, %16 : vector<8x64xf32>
    %c0_18 = arith.constant 0 : index
    %c0_19 = arith.constant 0 : index
    %c0_20 = arith.constant 0 : index
    %18 = vector.load %arg4[%c0_18, %c0_19, %c0_20] : memref<1x64x64xf32, #tpu.memory_space<vmem>>, vector<1x64x64xf32>
    %19 = vector.shape_cast %18 : vector<1x64x64xf32> to vector<64x64xf32>
    %cst_21 = arith.constant dense<0.000000e+00> : vector<8x64xf32>
    %20 = tpu.matmul %1, %19, %cst_21 {dimension_numbers = #tpu.dot_dimension_numbers<[1], [0], [0], [1], [0, 0, 1, 1], [], []>} : vector<8x64xf32>, vector<64x64xf32>, vector<8x64xf32> -> vector<8x64xf32>
    %c0_22 = arith.constant 0 : index
    %c0_23 = arith.constant 0 : index
    %c0_24 = arith.constant 0 : index
    %21 = vector.load %arg7[%c0_22, %c0_23, %c0_24] : memref<1x1x64xf32, #tpu.memory_space<vmem>>, vector<1x1x64xf32>
    %22 = vector.shape_cast %21 : vector<1x1x64xf32> to vector<1x64xf32>
    %23 = vector.broadcast %22 : vector<1x64xf32> to vector<8x64xf32>
    %24 = arith.addf %20, %23 : vector<8x64xf32>
    %25 = vector.extract_strided_slice %10 {offsets = [0, 0], sizes = [8, 8], strides = [1, 1]} : vector<8x64xf32> to vector<8x8xf32>
    %26 = vector.shape_cast %25 : vector<8x8xf32> to vector<1x8x8xf32>
    %27 = vector.extract_strided_slice %17 {offsets = [0, 0], sizes = [8, 8], strides = [1, 1]} : vector<8x64xf32> to vector<8x8xf32>
    %28 = vector.shape_cast %27 : vector<8x8xf32> to vector<1x8x8xf32>
    %29 = vector.extract_strided_slice %24 {offsets = [0, 0], sizes = [8, 8], strides = [1, 1]} : vector<8x64xf32> to vector<8x8xf32>
    %30 = vector.shape_cast %29 : vector<8x8xf32> to vector<1x8x8xf32>
    "tpu.trace_start"() <{level = 10 : i32, message = "bqd,bkd->bqk"}> : () -> ()
    %cst_25 = arith.constant dense<0.000000e+00> : vector<1x8x8xf32>
    %31 = tpu.matmul %26, %28, %cst_25 {dimension_numbers = #tpu.dot_dimension_numbers<[2], [2], [1], [1], [0, 0, 0, 1, 1, 1], [0], [0]>} : vector<1x8x8xf32>, vector<1x8x8xf32>, vector<1x8x8xf32> -> vector<1x8x8xf32>
    "tpu.trace_stop"() : () -> ()
    %cst_26 = arith.constant dense<0xFF800000> : vector<1x8xf32>
    %32 = vector.multi_reduction <maximumf>, %31, %cst_26 [2] : vector<1x8x8xf32> to vector<1x8xf32>
    %33 = vector.shape_cast %32 : vector<1x8xf32> to vector<1x8x1xf32>
    %34 = vector.broadcast %33 : vector<1x8x1xf32> to vector<1x8x8xf32>
    %35 = arith.subf %31, %34 : vector<1x8x8xf32>
    %36 = math.exp %35 : vector<1x8x8xf32>
    %cst_27 = arith.constant dense<0.000000e+00> : vector<1x8xf32>
    %37 = vector.multi_reduction <add>, %36, %cst_27 [2] : vector<1x8x8xf32> to vector<1x8xf32>
    %38 = vector.shape_cast %37 : vector<1x8xf32> to vector<1x8x1xf32>
    %39 = tpu.reciprocal %38 {approx = true} : vector<1x8x1xf32> -> vector<1x8x1xf32>
    %40 = vector.broadcast %39 : vector<1x8x1xf32> to vector<1x8x8xf32>
    %41 = arith.mulf %36, %40 : vector<1x8x8xf32>
    "tpu.trace_start"() <{level = 10 : i32, message = "bqk,bkd->bqd"}> : () -> ()
    %cst_28 = arith.constant dense<0.000000e+00> : vector<1x8x8xf32>
    %42 = tpu.matmul %41, %30, %cst_28 {dimension_numbers = #tpu.dot_dimension_numbers<[2], [1], [1], [2], [0, 0, 0, 1, 1, 2], [0], [0]>} : vector<1x8x8xf32>, vector<1x8x8xf32>, vector<1x8x8xf32> -> vector<1x8x8xf32>
    "tpu.trace_stop"() : () -> ()
    %43 = vector.shape_cast %42 : vector<1x8x8xf32> to vector<8x8xf32>
    %c0_29 = arith.constant 0 : index
    %c0_30 = arith.constant 0 : index
    %44 = vector.load %arg12[%c0_29, %c0_30] : memref<8x64xf32, #tpu.memory_space<vmem>>, vector<8x8xf32>
    tpu.vector_store %arg12[%c0_29, %c0_30], %43 {strides = array<i32>} : memref<8x64xf32, #tpu.memory_space<vmem>>, vector<8x8xf32>,
    %45 = vector.extract_strided_slice %10 {offsets = [0, 8], sizes = [8, 8], strides = [1, 1]} : vector<8x64xf32> to vector<8x8xf32>
    %46 = vector.shape_cast %45 : vector<8x8xf32> to vector<1x8x8xf32>
    %47 = vector.extract_strided_slice %17 {offsets = [0, 8], sizes = [8, 8], strides = [1, 1]} : vector<8x64xf32> to vector<8x8xf32>
    %48 = vector.shape_cast %47 : vector<8x8xf32> to vector<1x8x8xf32>
    %49 = vector.extract_strided_slice %24 {offsets = [0, 8], sizes = [8, 8], strides = [1, 1]} : vector<8x64xf32> to vector<8x8xf32>
    %50 = vector.shape_cast %49 : vector<8x8xf32> to vector<1x8x8xf32>
    "tpu.trace_start"() <{level = 10 : i32, message = "bqd,bkd->bqk"}> : () -> ()
    %cst_31 = arith.constant dense<0.000000e+00> : vector<1x8x8xf32>
    %51 = tpu.matmul %46, %48, %cst_31 {dimension_numbers = #tpu.dot_dimension_numbers<[2], [2], [1], [1], [0, 0, 0, 1, 1, 1], [0], [0]>} : vector<1x8x8xf32>, vector<1x8x8xf32>, vector<1x8x8xf32> -> vector<1x8x8xf32>
    "tpu.trace_stop"() : () -> ()
    %cst_32 = arith.constant dense<0xFF800000> : vector<1x8xf32>
    %52 = vector.multi_reduction <maximumf>, %51, %cst_32 [2] : vector<1x8x8xf32> to vector<1x8xf32>
    %53 = vector.shape_cast %52 : vector<1x8xf32> to vector<1x8x1xf32>
    %54 = vector.broadcast %53 : vector<1x8x1xf32> to vector<1x8x8xf32>
    %55 = arith.subf %51, %54 : vector<1x8x8xf32>
    %56 = math.exp %55 : vector<1x8x8xf32>
    %cst_33 = arith.constant dense<0.000000e+00> : vector<1x8xf32>
    %57 = vector.multi_reduction <add>, %56, %cst_33 [2] : vector<1x8x8xf32> to vector<1x8xf32>
    %58 = vector.shape_cast %57 : vector<1x8xf32> to vector<1x8x1xf32>
    %59 = tpu.reciprocal %58 {approx = true} : vector<1x8x1xf32> -> vector<1x8x1xf32>
    %60 = vector.broadcast %59 : vector<1x8x1xf32> to vector<1x8x8xf32>
    %61 = arith.mulf %56, %60 : vector<1x8x8xf32>
    "tpu.trace_start"() <{level = 10 : i32, message = "bqk,bkd->bqd"}> : () -> ()
    %cst_34 = arith.constant dense<0.000000e+00> : vector<1x8x8xf32>
    %62 = tpu.matmul %61, %50, %cst_34 {dimension_numbers = #tpu.dot_dimension_numbers<[2], [1], [1], [2], [0, 0, 0, 1, 1, 2], [0], [0]>} : vector<1x8x8xf32>, vector<1x8x8xf32>, vector<1x8x8xf32> -> vector<1x8x8xf32>
    "tpu.trace_stop"() : () -> ()
    %63 = vector.shape_cast %62 : vector<1x8x8xf32> to vector<8x8xf32>
    %c0_35 = arith.constant 0 : index
    %c8 = arith.constant 8 : index
    %64 = vector.load %arg12[%c0_35, %c8] : memref<8x64xf32, #tpu.memory_space<vmem>>, vector<8x8xf32>
    tpu.vector_store %arg12[%c0_35, %c8], %63 {strides = array<i32>} : memref<8x64xf32, #tpu.memory_space<vmem>>, vector<8x8xf32>,
    %65 = vector.extract_strided_slice %10 {offsets = [0, 16], sizes = [8, 8], strides = [1, 1]} : vector<8x64xf32> to vector<8x8xf32>
    %66 = vector.shape_cast %65 : vector<8x8xf32> to vector<1x8x8xf32>
    %67 = vector.extract_strided_slice %17 {offsets = [0, 16], sizes = [8, 8], strides = [1, 1]} : vector<8x64xf32> to vector<8x8xf32>
    %68 = vector.shape_cast %67 : vector<8x8xf32> to vector<1x8x8xf32>
    %69 = vector.extract_strided_slice %24 {offsets = [0, 16], sizes = [8, 8], strides = [1, 1]} : vector<8x64xf32> to vector<8x8xf32>
    %70 = vector.shape_cast %69 : vector<8x8xf32> to vector<1x8x8xf32>
    "tpu.trace_start"() <{level = 10 : i32, message = "bqd,bkd->bqk"}> : () -> ()
    %cst_36 = arith.constant dense<0.000000e+00> : vector<1x8x8xf32>
    %71 = tpu.matmul %66, %68, %cst_36 {dimension_numbers = #tpu.dot_dimension_numbers<[2], [2], [1], [1], [0, 0, 0, 1, 1, 1], [0], [0]>} : vector<1x8x8xf32>, vector<1x8x8xf32>, vector<1x8x8xf32> -> vector<1x8x8xf32>
    "tpu.trace_stop"() : () -> ()
    %cst_37 = arith.constant dense<0xFF800000> : vector<1x8xf32>
    %72 = vector.multi_reduction <maximumf>, %71, %cst_37 [2] : vector<1x8x8xf32> to vector<1x8xf32>
    %73 = vector.shape_cast %72 : vector<1x8xf32> to vector<1x8x1xf32>
    %74 = vector.broadcast %73 : vector<1x8x1xf32> to vector<1x8x8xf32>
    %75 = arith.subf %71, %74 : vector<1x8x8xf32>
    %76 = math.exp %75 : vector<1x8x8xf32>
    %cst_38 = arith.constant dense<0.000000e+00> : vector<1x8xf32>
    %77 = vector.multi_reduction <add>, %76, %cst_38 [2] : vector<1x8x8xf32> to vector<1x8xf32>
    %78 = vector.shape_cast %77 : vector<1x8xf32> to vector<1x8x1xf32>
    %79 = tpu.reciprocal %78 {approx = true} : vector<1x8x1xf32> -> vector<1x8x1xf32>
    %80 = vector.broadcast %79 : vector<1x8x1xf32> to vector<1x8x8xf32>
    %81 = arith.mulf %76, %80 : vector<1x8x8xf32>
    "tpu.trace_start"() <{level = 10 : i32, message = "bqk,bkd->bqd"}> : () -> ()
    %cst_39 = arith.constant dense<0.000000e+00> : vector<1x8x8xf32>
    %82 = tpu.matmul %81, %70, %cst_39 {dimension_numbers = #tpu.dot_dimension_numbers<[2], [1], [1], [2], [0, 0, 0, 1, 1, 2], [0], [0]>} : vector<1x8x8xf32>, vector<1x8x8xf32>, vector<1x8x8xf32> -> vector<1x8x8xf32>
    "tpu.trace_stop"() : () -> ()
    %83 = vector.shape_cast %82 : vector<1x8x8xf32> to vector<8x8xf32>
    %c0_40 = arith.constant 0 : index
    %c16 = arith.constant 16 : index
    %84 = vector.load %arg12[%c0_40, %c16] : memref<8x64xf32, #tpu.memory_space<vmem>>, vector<8x8xf32>
    tpu.vector_store %arg12[%c0_40, %c16], %83 {strides = array<i32>} : memref<8x64xf32, #tpu.memory_space<vmem>>, vector<8x8xf32>,
    %85 = vector.extract_strided_slice %10 {offsets = [0, 24], sizes = [8, 8], strides = [1, 1]} : vector<8x64xf32> to vector<8x8xf32>
    %86 = vector.shape_cast %85 : vector<8x8xf32> to vector<1x8x8xf32>
    %87 = vector.extract_strided_slice %17 {offsets = [0, 24], sizes = [8, 8], strides = [1, 1]} : vector<8x64xf32> to vector<8x8xf32>
    %88 = vector.shape_cast %87 : vector<8x8xf32> to vector<1x8x8xf32>
    %89 = vector.extract_strided_slice %24 {offsets = [0, 24], sizes = [8, 8], strides = [1, 1]} : vector<8x64xf32> to vector<8x8xf32>
    %90 = vector.shape_cast %89 : vector<8x8xf32> to vector<1x8x8xf32>
    "tpu.trace_start"() <{level = 10 : i32, message = "bqd,bkd->bqk"}> : () -> ()
    %cst_41 = arith.constant dense<0.000000e+00> : vector<1x8x8xf32>
    %91 = tpu.matmul %86, %88, %cst_41 {dimension_numbers = #tpu.dot_dimension_numbers<[2], [2], [1], [1], [0, 0, 0, 1, 1, 1], [0], [0]>} : vector<1x8x8xf32>, vector<1x8x8xf32>, vector<1x8x8xf32> -> vector<1x8x8xf32>
    "tpu.trace_stop"() : () -> ()
    %cst_42 = arith.constant dense<0xFF800000> : vector<1x8xf32>
    %92 = vector.multi_reduction <maximumf>, %91, %cst_42 [2] : vector<1x8x8xf32> to vector<1x8xf32>
    %93 = vector.shape_cast %92 : vector<1x8xf32> to vector<1x8x1xf32>
    %94 = vector.broadcast %93 : vector<1x8x1xf32> to vector<1x8x8xf32>
    %95 = arith.subf %91, %94 : vector<1x8x8xf32>
    %96 = math.exp %95 : vector<1x8x8xf32>
    %cst_43 = arith.constant dense<0.000000e+00> : vector<1x8xf32>
    %97 = vector.multi_reduction <add>, %96, %cst_43 [2] : vector<1x8x8xf32> to vector<1x8xf32>
    %98 = vector.shape_cast %97 : vector<1x8xf32> to vector<1x8x1xf32>
    %99 = tpu.reciprocal %98 {approx = true} : vector<1x8x1xf32> -> vector<1x8x1xf32>
    %100 = vector.broadcast %99 : vector<1x8x1xf32> to vector<1x8x8xf32>
    %101 = arith.mulf %96, %100 : vector<1x8x8xf32>
    "tpu.trace_start"() <{level = 10 : i32, message = "bqk,bkd->bqd"}> : () -> ()
    %cst_44 = arith.constant dense<0.000000e+00> : vector<1x8x8xf32>
    %102 = tpu.matmul %101, %90, %cst_44 {dimension_numbers = #tpu.dot_dimension_numbers<[2], [1], [1], [2], [0, 0, 0, 1, 1, 2], [0], [0]>} : vector<1x8x8xf32>, vector<1x8x8xf32>, vector<1x8x8xf32> -> vector<1x8x8xf32>
    "tpu.trace_stop"() : () -> ()
    %103 = vector.shape_cast %102 : vector<1x8x8xf32> to vector<8x8xf32>
    %c0_45 = arith.constant 0 : index
    %c24 = arith.constant 24 : index
    %104 = vector.load %arg12[%c0_45, %c24] : memref<8x64xf32, #tpu.memory_space<vmem>>, vector<8x8xf32>
    tpu.vector_store %arg12[%c0_45, %c24], %103 {strides = array<i32>} : memref<8x64xf32, #tpu.memory_space<vmem>>, vector<8x8xf32>,
    %105 = vector.extract_strided_slice %10 {offsets = [0, 32], sizes = [8, 8], strides = [1, 1]} : vector<8x64xf32> to vector<8x8xf32>
    %106 = vector.shape_cast %105 : vector<8x8xf32> to vector<1x8x8xf32>
    %107 = vector.extract_strided_slice %17 {offsets = [0, 32], sizes = [8, 8], strides = [1, 1]} : vector<8x64xf32> to vector<8x8xf32>
    %108 = vector.shape_cast %107 : vector<8x8xf32> to vector<1x8x8xf32>
    %109 = vector.extract_strided_slice %24 {offsets = [0, 32], sizes = [8, 8], strides = [1, 1]} : vector<8x64xf32> to vector<8x8xf32>
    %110 = vector.shape_cast %109 : vector<8x8xf32> to vector<1x8x8xf32>
    "tpu.trace_start"() <{level = 10 : i32, message = "bqd,bkd->bqk"}> : () -> ()
    %cst_46 = arith.constant dense<0.000000e+00> : vector<1x8x8xf32>
    %111 = tpu.matmul %106, %108, %cst_46 {dimension_numbers = #tpu.dot_dimension_numbers<[2], [2], [1], [1], [0, 0, 0, 1, 1, 1], [0], [0]>} : vector<1x8x8xf32>, vector<1x8x8xf32>, vector<1x8x8xf32> -> vector<1x8x8xf32>
    "tpu.trace_stop"() : () -> ()
    %cst_47 = arith.constant dense<0xFF800000> : vector<1x8xf32>
    %112 = vector.multi_reduction <maximumf>, %111, %cst_47 [2] : vector<1x8x8xf32> to vector<1x8xf32>
    %113 = vector.shape_cast %112 : vector<1x8xf32> to vector<1x8x1xf32>
    %114 = vector.broadcast %113 : vector<1x8x1xf32> to vector<1x8x8xf32>
    %115 = arith.subf %111, %114 : vector<1x8x8xf32>
    %116 = math.exp %115 : vector<1x8x8xf32>
    %cst_48 = arith.constant dense<0.000000e+00> : vector<1x8xf32>
    %117 = vector.multi_reduction <add>, %116, %cst_48 [2] : vector<1x8x8xf32> to vector<1x8xf32>
    %118 = vector.shape_cast %117 : vector<1x8xf32> to vector<1x8x1xf32>
    %119 = tpu.reciprocal %118 {approx = true} : vector<1x8x1xf32> -> vector<1x8x1xf32>
    %120 = vector.broadcast %119 : vector<1x8x1xf32> to vector<1x8x8xf32>
    %121 = arith.mulf %116, %120 : vector<1x8x8xf32>
    "tpu.trace_start"() <{level = 10 : i32, message = "bqk,bkd->bqd"}> : () -> ()
    %cst_49 = arith.constant dense<0.000000e+00> : vector<1x8x8xf32>
    %122 = tpu.matmul %121, %110, %cst_49 {dimension_numbers = #tpu.dot_dimension_numbers<[2], [1], [1], [2], [0, 0, 0, 1, 1, 2], [0], [0]>} : vector<1x8x8xf32>, vector<1x8x8xf32>, vector<1x8x8xf32> -> vector<1x8x8xf32>
    "tpu.trace_stop"() : () -> ()
    %123 = vector.shape_cast %122 : vector<1x8x8xf32> to vector<8x8xf32>
    %c0_50 = arith.constant 0 : index
    %c32 = arith.constant 32 : index
    %124 = vector.load %arg12[%c0_50, %c32] : memref<8x64xf32, #tpu.memory_space<vmem>>, vector<8x8xf32>
    tpu.vector_store %arg12[%c0_50, %c32], %123 {strides = array<i32>} : memref<8x64xf32, #tpu.memory_space<vmem>>, vector<8x8xf32>,
    %125 = vector.extract_strided_slice %10 {offsets = [0, 40], sizes = [8, 8], strides = [1, 1]} : vector<8x64xf32> to vector<8x8xf32>
    %126 = vector.shape_cast %125 : vector<8x8xf32> to vector<1x8x8xf32>
    %127 = vector.extract_strided_slice %17 {offsets = [0, 40], sizes = [8, 8], strides = [1, 1]} : vector<8x64xf32> to vector<8x8xf32>
    %128 = vector.shape_cast %127 : vector<8x8xf32> to vector<1x8x8xf32>
    %129 = vector.extract_strided_slice %24 {offsets = [0, 40], sizes = [8, 8], strides = [1, 1]} : vector<8x64xf32> to vector<8x8xf32>
    %130 = vector.shape_cast %129 : vector<8x8xf32> to vector<1x8x8xf32>
    "tpu.trace_start"() <{level = 10 : i32, message = "bqd,bkd->bqk"}> : () -> ()
    %cst_51 = arith.constant dense<0.000000e+00> : vector<1x8x8xf32>
    %131 = tpu.matmul %126, %128, %cst_51 {dimension_numbers = #tpu.dot_dimension_numbers<[2], [2], [1], [1], [0, 0, 0, 1, 1, 1], [0], [0]>} : vector<1x8x8xf32>, vector<1x8x8xf32>, vector<1x8x8xf32> -> vector<1x8x8xf32>
    "tpu.trace_stop"() : () -> ()
    %cst_52 = arith.constant dense<0xFF800000> : vector<1x8xf32>
    %132 = vector.multi_reduction <maximumf>, %131, %cst_52 [2] : vector<1x8x8xf32> to vector<1x8xf32>
    %133 = vector.shape_cast %132 : vector<1x8xf32> to vector<1x8x1xf32>
    %134 = vector.broadcast %133 : vector<1x8x1xf32> to vector<1x8x8xf32>
    %135 = arith.subf %131, %134 : vector<1x8x8xf32>
    %136 = math.exp %135 : vector<1x8x8xf32>
    %cst_53 = arith.constant dense<0.000000e+00> : vector<1x8xf32>
    %137 = vector.multi_reduction <add>, %136, %cst_53 [2] : vector<1x8x8xf32> to vector<1x8xf32>
    %138 = vector.shape_cast %137 : vector<1x8xf32> to vector<1x8x1xf32>
    %139 = tpu.reciprocal %138 {approx = true} : vector<1x8x1xf32> -> vector<1x8x1xf32>
    %140 = vector.broadcast %139 : vector<1x8x1xf32> to vector<1x8x8xf32>
    %141 = arith.mulf %136, %140 : vector<1x8x8xf32>
    "tpu.trace_start"() <{level = 10 : i32, message = "bqk,bkd->bqd"}> : () -> ()
    %cst_54 = arith.constant dense<0.000000e+00> : vector<1x8x8xf32>
    %142 = tpu.matmul %141, %130, %cst_54 {dimension_numbers = #tpu.dot_dimension_numbers<[2], [1], [1], [2], [0, 0, 0, 1, 1, 2], [0], [0]>} : vector<1x8x8xf32>, vector<1x8x8xf32>, vector<1x8x8xf32> -> vector<1x8x8xf32>
    "tpu.trace_stop"() : () -> ()
    %143 = vector.shape_cast %142 : vector<1x8x8xf32> to vector<8x8xf32>
    %c0_55 = arith.constant 0 : index
    %c40 = arith.constant 40 : index
    %144 = vector.load %arg12[%c0_55, %c40] : memref<8x64xf32, #tpu.memory_space<vmem>>, vector<8x8xf32>
    tpu.vector_store %arg12[%c0_55, %c40], %143 {strides = array<i32>} : memref<8x64xf32, #tpu.memory_space<vmem>>, vector<8x8xf32>,
    %145 = vector.extract_strided_slice %10 {offsets = [0, 48], sizes = [8, 8], strides = [1, 1]} : vector<8x64xf32> to vector<8x8xf32>
    %146 = vector.shape_cast %145 : vector<8x8xf32> to vector<1x8x8xf32>
    %147 = vector.extract_strided_slice %17 {offsets = [0, 48], sizes = [8, 8], strides = [1, 1]} : vector<8x64xf32> to vector<8x8xf32>
    %148 = vector.shape_cast %147 : vector<8x8xf32> to vector<1x8x8xf32>
    %149 = vector.extract_strided_slice %24 {offsets = [0, 48], sizes = [8, 8], strides = [1, 1]} : vector<8x64xf32> to vector<8x8xf32>
    %150 = vector.shape_cast %149 : vector<8x8xf32> to vector<1x8x8xf32>
    "tpu.trace_start"() <{level = 10 : i32, message = "bqd,bkd->bqk"}> : () -> ()
    %cst_56 = arith.constant dense<0.000000e+00> : vector<1x8x8xf32>
    %151 = tpu.matmul %146, %148, %cst_56 {dimension_numbers = #tpu.dot_dimension_numbers<[2], [2], [1], [1], [0, 0, 0, 1, 1, 1], [0], [0]>} : vector<1x8x8xf32>, vector<1x8x8xf32>, vector<1x8x8xf32> -> vector<1x8x8xf32>
    "tpu.trace_stop"() : () -> ()
    %cst_57 = arith.constant dense<0xFF800000> : vector<1x8xf32>
    %152 = vector.multi_reduction <maximumf>, %151, %cst_57 [2] : vector<1x8x8xf32> to vector<1x8xf32>
    %153 = vector.shape_cast %152 : vector<1x8xf32> to vector<1x8x1xf32>
    %154 = vector.broadcast %153 : vector<1x8x1xf32> to vector<1x8x8xf32>
    %155 = arith.subf %151, %154 : vector<1x8x8xf32>
    %156 = math.exp %155 : vector<1x8x8xf32>
    %cst_58 = arith.constant dense<0.000000e+00> : vector<1x8xf32>
    %157 = vector.multi_reduction <add>, %156, %cst_58 [2] : vector<1x8x8xf32> to vector<1x8xf32>
    %158 = vector.shape_cast %157 : vector<1x8xf32> to vector<1x8x1xf32>
    %159 = tpu.reciprocal %158 {approx = true} : vector<1x8x1xf32> -> vector<1x8x1xf32>
    %160 = vector.broadcast %159 : vector<1x8x1xf32> to vector<1x8x8xf32>
    %161 = arith.mulf %156, %160 : vector<1x8x8xf32>
    "tpu.trace_start"() <{level = 10 : i32, message = "bqk,bkd->bqd"}> : () -> ()
    %cst_59 = arith.constant dense<0.000000e+00> : vector<1x8x8xf32>
    %162 = tpu.matmul %161, %150, %cst_59 {dimension_numbers = #tpu.dot_dimension_numbers<[2], [1], [1], [2], [0, 0, 0, 1, 1, 2], [0], [0]>} : vector<1x8x8xf32>, vector<1x8x8xf32>, vector<1x8x8xf32> -> vector<1x8x8xf32>
    "tpu.trace_stop"() : () -> ()
    %163 = vector.shape_cast %162 : vector<1x8x8xf32> to vector<8x8xf32>
    %c0_60 = arith.constant 0 : index
    %c48 = arith.constant 48 : index
    %164 = vector.load %arg12[%c0_60, %c48] : memref<8x64xf32, #tpu.memory_space<vmem>>, vector<8x8xf32>
    tpu.vector_store %arg12[%c0_60, %c48], %163 {strides = array<i32>} : memref<8x64xf32, #tpu.memory_space<vmem>>, vector<8x8xf32>,
    %165 = vector.extract_strided_slice %10 {offsets = [0, 56], sizes = [8, 8], strides = [1, 1]} : vector<8x64xf32> to vector<8x8xf32>
    %166 = vector.shape_cast %165 : vector<8x8xf32> to vector<1x8x8xf32>
    %167 = vector.extract_strided_slice %17 {offsets = [0, 56], sizes = [8, 8], strides = [1, 1]} : vector<8x64xf32> to vector<8x8xf32>
    %168 = vector.shape_cast %167 : vector<8x8xf32> to vector<1x8x8xf32>
    %169 = vector.extract_strided_slice %24 {offsets = [0, 56], sizes = [8, 8], strides = [1, 1]} : vector<8x64xf32> to vector<8x8xf32>
    %170 = vector.shape_cast %169 : vector<8x8xf32> to vector<1x8x8xf32>
    "tpu.trace_start"() <{level = 10 : i32, message = "bqd,bkd->bqk"}> : () -> ()
    %cst_61 = arith.constant dense<0.000000e+00> : vector<1x8x8xf32>
    %171 = tpu.matmul %166, %168, %cst_61 {dimension_numbers = #tpu.dot_dimension_numbers<[2], [2], [1], [1], [0, 0, 0, 1, 1, 1], [0], [0]>} : vector<1x8x8xf32>, vector<1x8x8xf32>, vector<1x8x8xf32> -> vector<1x8x8xf32>
    "tpu.trace_stop"() : () -> ()
    %cst_62 = arith.constant dense<0xFF800000> : vector<1x8xf32>
    %172 = vector.multi_reduction <maximumf>, %171, %cst_62 [2] : vector<1x8x8xf32> to vector<1x8xf32>
    %173 = vector.shape_cast %172 : vector<1x8xf32> to vector<1x8x1xf32>
    %174 = vector.broadcast %173 : vector<1x8x1xf32> to vector<1x8x8xf32>
    %175 = arith.subf %171, %174 : vector<1x8x8xf32>
    %176 = math.exp %175 : vector<1x8x8xf32>
    %cst_63 = arith.constant dense<0.000000e+00> : vector<1x8xf32>
    %177 = vector.multi_reduction <add>, %176, %cst_63 [2] : vector<1x8x8xf32> to vector<1x8xf32>
    %178 = vector.shape_cast %177 : vector<1x8xf32> to vector<1x8x1xf32>
    %179 = tpu.reciprocal %178 {approx = true} : vector<1x8x1xf32> -> vector<1x8x1xf32>
    %180 = vector.broadcast %179 : vector<1x8x1xf32> to vector<1x8x8xf32>
    %181 = arith.mulf %176, %180 : vector<1x8x8xf32>
    "tpu.trace_start"() <{level = 10 : i32, message = "bqk,bkd->bqd"}> : () -> ()
    %cst_64 = arith.constant dense<0.000000e+00> : vector<1x8x8xf32>
    %182 = tpu.matmul %181, %170, %cst_64 {dimension_numbers = #tpu.dot_dimension_numbers<[2], [1], [1], [2], [0, 0, 0, 1, 1, 2], [0], [0]>} : vector<1x8x8xf32>, vector<1x8x8xf32>, vector<1x8x8xf32> -> vector<1x8x8xf32>
    "tpu.trace_stop"() : () -> ()
    %183 = vector.shape_cast %182 : vector<1x8x8xf32> to vector<8x8xf32>
    %c0_65 = arith.constant 0 : index
    %c56 = arith.constant 56 : index
    %184 = vector.load %arg12[%c0_65, %c56] : memref<8x64xf32, #tpu.memory_space<vmem>>, vector<8x8xf32>
    tpu.vector_store %arg12[%c0_65, %c56], %183 {strides = array<i32>} : memref<8x64xf32, #tpu.memory_space<vmem>>, vector<8x8xf32>,
    %c0_66 = arith.constant 0 : index
    %c0_67 = arith.constant 0 : index
    %185 = vector.load %arg11[%c0_66, %c0_67] : memref<8x64xf32, #tpu.memory_space<vmem>>, vector<8x64xf32>
    %c0_68 = arith.constant 0 : index
    %c0_69 = arith.constant 0 : index
    %186 = vector.load %arg12[%c0_68, %c0_69] : memref<8x64xf32, #tpu.memory_space<vmem>>, vector<8x64xf32>
    %c0_70 = arith.constant 0 : index
    %c0_71 = arith.constant 0 : index
    %c0_72 = arith.constant 0 : index
    %187 = vector.load %arg8[%c0_70, %c0_71, %c0_72] : memref<1x64x64xf32, #tpu.memory_space<vmem>>, vector<1x64x64xf32>
    %188 = vector.shape_cast %187 : vector<1x64x64xf32> to vector<64x64xf32>
    %cst_73 = arith.constant dense<0.000000e+00> : vector<8x64xf32>
    %189 = tpu.matmul %186, %188, %cst_73 {dimension_numbers = #tpu.dot_dimension_numbers<[1], [0], [0], [1], [0, 0, 1, 1], [], []>} : vector<8x64xf32>, vector<64x64xf32>, vector<8x64xf32> -> vector<8x64xf32>
    %190 = arith.addf %185, %189 : vector<8x64xf32>
    %c0_74 = arith.constant 0 : index
    %c0_75 = arith.constant 0 : index
    %191 = vector.load %arg11[%c0_74, %c0_75] : memref<8x64xf32, #tpu.memory_space<vmem>>, vector<8x64xf32>
    tpu.vector_store %arg11[%c0_74, %c0_75], %190 {strides = array<i32>} : memref<8x64xf32, #tpu.memory_space<vmem>>, vector<8x64xf32>,
    %c0_76 = arith.constant 0 : index
    %c0_77 = arith.constant 0 : index
    %192 = vector.load %arg11[%c0_76, %c0_77] : memref<8x64xf32, #tpu.memory_space<vmem>>, vector<8x64xf32>
    %c0_78 = arith.constant 0 : index
    %c0_79 = arith.constant 0 : index
    %193 = vector.load %arg9[%c0_78, %c0_79] : memref<1x64xf32, #tpu.memory_space<vmem>>, vector<1x64xf32>
    %194 = vector.broadcast %193 : vector<1x64xf32> to vector<8x64xf32>
    %195 = arith.addf %192, %194 : vector<8x64xf32>
    %196 = vector.shape_cast %195 : vector<8x64xf32> to vector<1x8x64xf32>
    %c0_80 = arith.constant 0 : index
    %c0_81 = arith.constant 0 : index
    %c0_82 = arith.constant 0 : index
    %197 = vector.load %arg10[%c0_80, %c0_81, %c0_82] : memref<1x8x64xf32, #tpu.memory_space<vmem>>, vector<1x8x64xf32>
    tpu.vector_store %arg10[%c0_80, %c0_81, %c0_82], %196 {strides = array<i32>} : memref<1x8x64xf32, #tpu.memory_space<vmem>>, vector<1x8x64xf32>,
    return
  }
  func.func @transform_0(%arg0: i32) -> (i32, i32, i32) {
    %c0_i32 = arith.constant 0 : i32
    %c0_i32_0 = arith.constant 0 : i32
    %c0_i32_1 = arith.constant 0 : i32
    return %arg0, %c0_i32, %c0_i32_0 : i32, i32, i32
  }
  func.func @transform_1(%arg0: i32) -> (i32, i32, i32) {
    %c0_i32 = arith.constant 0 : i32
    %c0_i32_0 = arith.constant 0 : i32
    %c0_i32_1 = arith.constant 0 : i32
    %c0_i32_2 = arith.constant 0 : i32
    return %c0_i32, %c0_i32_0, %c0_i32_1 : i32, i32, i32
  }
  func.func @transform_2(%arg0: i32) -> (i32, i32, i32) {
    %c0_i32 = arith.constant 0 : i32
    %c0_i32_0 = arith.constant 0 : i32
    %c0_i32_1 = arith.constant 0 : i32
    %c0_i32_2 = arith.constant 0 : i32
    return %c0_i32, %c0_i32_0, %c0_i32_1 : i32, i32, i32
  }
  func.func @transform_3(%arg0: i32) -> (i32, i32, i32) {
    %c0_i32 = arith.constant 0 : i32
    %c0_i32_0 = arith.constant 0 : i32
    %c0_i32_1 = arith.constant 0 : i32
    %c0_i32_2 = arith.constant 0 : i32
    return %c0_i32, %c0_i32_0, %c0_i32_1 : i32, i32, i32
  }
  func.func @transform_4(%arg0: i32) -> (i32, i32, i32) {
    %c0_i32 = arith.constant 0 : i32
    %c0_i32_0 = arith.constant 0 : i32
    %c0_i32_1 = arith.constant 0 : i32
    %c0_i32_2 = arith.constant 0 : i32
    return %c0_i32, %c0_i32_0, %c0_i32_1 : i32, i32, i32
  }
  func.func @transform_5(%arg0: i32) -> (i32, i32, i32) {
    %c0_i32 = arith.constant 0 : i32
    %c0_i32_0 = arith.constant 0 : i32
    %c0_i32_1 = arith.constant 0 : i32
    %c0_i32_2 = arith.constant 0 : i32
    return %c0_i32, %c0_i32_0, %c0_i32_1 : i32, i32, i32
  }
  func.func @transform_6(%arg0: i32) -> (i32, i32, i32) {
    %c0_i32 = arith.constant 0 : i32
    %c0_i32_0 = arith.constant 0 : i32
    %c0_i32_1 = arith.constant 0 : i32
    %c0_i32_2 = arith.constant 0 : i32
    return %c0_i32, %c0_i32_0, %c0_i32_1 : i32, i32, i32
  }
  func.func @transform_7(%arg0: i32) -> (i32, i32, i32) {
    %c0_i32 = arith.constant 0 : i32
    %c0_i32_0 = arith.constant 0 : i32
    %c0_i32_1 = arith.constant 0 : i32
    %c0_i32_2 = arith.constant 0 : i32
    return %c0_i32, %c0_i32_0, %c0_i32_1 : i32, i32, i32
  }
  func.func @transform_8(%arg0: i32) -> (i32, i32) {
    %c0_i32 = arith.constant 0 : i32
    %c0_i32_0 = arith.constant 0 : i32
    %c0_i32_1 = arith.constant 0 : i32
    return %c0_i32, %c0_i32_0 : i32, i32
  }
  func.func @transform_9(%arg0: i32) -> (i32, i32, i32) {
    %c0_i32 = arith.constant 0 : i32
    %c0_i32_0 = arith.constant 0 : i32
    %c0_i32_1 = arith.constant 0 : i32
    return %arg0, %c0_i32, %c0_i32_0 : i32, i32, i32
  }
}

module attributes {stable_mosaic.version = 11 : i64} {
  func.func @_mha_kernel(%arg0: i32, %arg1: memref<1x8x64xf32, #tpu.memory_space<vmem>>, %arg2: memref<1x64x64xf32, #tpu.memory_space<vmem>>, %arg3: memref<1x64x64xf32, #tpu.memory_space<vmem>>, %arg4: memref<1x64x64xf32, #tpu.memory_space<vmem>>, %arg5: memref<1x1x64xf32, #tpu.memory_space<vmem>>, %arg6: memref<1x1x64xf32, #tpu.memory_space<vmem>>, %arg7: memref<1x1x64xf32, #tpu.memory_space<vmem>>, %arg8: memref<1x64x64xf32, #tpu.memory_space<vmem>>, %arg9: memref<1x64xf32, #tpu.memory_space<vmem>>, %arg10: memref<1x8x64xf32, #tpu.memory_space<vmem>>, %arg11: memref<8x64xf32, #tpu.memory_space<vmem>>, %arg12: memref<8x64xf32, #tpu.memory_space<vmem>>) attributes {dimension_semantics = [#tpu.dimension_semantics<parallel>], iteration_bounds = array<i64: 2>, scalar_prefetch = 0 : i64, scratch_operands = 2 : i64, tpu.core_type = #tpu.core_type<tc>, window_params = [{transform_indices = @transform_0, window_bounds = array<i64: 1, 8, 64>}, {pipeline_mode = #tpu.pipeline_mode<synchronous>, transform_indices = @transform_1, window_bounds = array<i64: 1, 64, 64>}, {pipeline_mode = #tpu.pipeline_mode<synchronous>, transform_indices = @transform_2, window_bounds = array<i64: 1, 64, 64>}, {pipeline_mode = #tpu.pipeline_mode<synchronous>, transform_indices = @transform_3, window_bounds = array<i64: 1, 64, 64>}, {pipeline_mode = #tpu.pipeline_mode<synchronous>, transform_indices = @transform_4, window_bounds = array<i64: 1, 1, 64>}, {pipeline_mode = #tpu.pipeline_mode<synchronous>, transform_indices = @transform_5, window_bounds = array<i64: 1, 1, 64>}, {pipeline_mode = #tpu.pipeline_mode<synchronous>, transform_indices = @transform_6, window_bounds = array<i64: 1, 1, 64>}, {pipeline_mode = #tpu.pipeline_mode<synchronous>, transform_indices = @transform_7, window_bounds = array<i64: 1, 64, 64>}, {pipeline_mode = #tpu.pipeline_mode<synchronous>, transform_indices = @transform_8, window_bounds = array<i64: 1, 64>}, {transform_indices = @transform_9, window_bounds = array<i64: 1, 8, 64>}]} {
    %c0 = arith.constant 0 : index
    %c0_0 = arith.constant 0 : index
    %c0_1 = arith.constant 0 : index
    %0 = vector.load %arg1[%c0, %c0_0, %c0_1] : memref<1x8x64xf32, #tpu.memory_space<vmem>>, vector<1x8x64xf32>
    %1 = vector.shape_cast %0 : vector<1x8x64xf32> to vector<8x64xf32>
    %cst = arith.constant 0.000000e+00 : f32
    %2 = vector.broadcast %cst : f32 to vector<8x64xf32>
    %c0_2 = arith.constant 0 : index
    %c0_3 = arith.constant 0 : index
    %3 = vector.load %arg11[%c0_2, %c0_3] : memref<8x64xf32, #tpu.memory_space<vmem>>, vector<8x64xf32>
    tpu.vector_store %arg11[%c0_2, %c0_3], %2 {strides = array<i32>} : memref<8x64xf32, #tpu.memory_space<vmem>>, vector<8x64xf32>,
    %c0_4 = arith.constant 0 : index
    %c0_5 = arith.constant 0 : index
    %c0_6 = arith.constant 0 : index
    %4 = vector.load %arg2[%c0_4, %c0_5, %c0_6] : memref<1x64x64xf32, #tpu.memory_space<vmem>>, vector<1x64x64xf32>
    %5 = vector.shape_cast %4 : vector<1x64x64xf32> to vector<64x64xf32>
    %cst_7 = arith.constant dense<0.000000e+00> : vector<8x64xf32>
    %6 = tpu.matmul %1, %5, %cst_7 {dimension_numbers = #tpu.dot_dimension_numbers<[1], [0], [0], [1], [0, 0, 1, 1], [], []>} : vector<8x64xf32>, vector<64x64xf32>, vector<8x64xf32> -> vector<8x64xf32>
    %c0_8 = arith.constant 0 : index
    %c0_9 = arith.constant 0 : index
    %c0_10 = arith.constant 0 : index
    %7 = vector.load %arg5[%c0_8, %c0_9, %c0_10] : memref<1x1x64xf32, #tpu.memory_space<vmem>>, vector<1x1x64xf32>
    %8 = vector.shape_cast %7 : vector<1x1x64xf32> to vector<1x64xf32>
    %9 = vector.broadcast %8 : vector<1x64xf32> to vector<8x64xf32>
    %10 = arith.addf %6, %9 : vector<8x64xf32>
    %c0_11 = arith.constant 0 : index
    %c0_12 = arith.constant 0 : index
    %c0_13 = arith.constant 0 : index
    %11 = vector.load %arg3[%c0_11, %c0_12, %c0_13] : memref<1x64x64xf32, #tpu.memory_space<vmem>>, vector<1x64x64xf32>
    %12 = vector.shape_cast %11 : vector<1x64x64xf32> to vector<64x64xf32>
    %cst_14 = arith.constant dense<0.000000e+00> : vector<8x64xf32>
    %13 = tpu.matmul %1, %12, %cst_14 {dimension_numbers = #tpu.dot_dimension_numbers<[1], [0], [0], [1], [0, 0, 1, 1], [], []>} : vector<8x64xf32>, vector<64x64xf32>, vector<8x64xf32> -> vector<8x64xf32>
    %c0_15 = arith.constant 0 : index
    %c0_16 = arith.constant 0 : index
    %c0_17 = arith.constant 0 : index
    %14 = vector.load %arg6[%c0_15, %c0_16, %c0_17] : memref<1x1x64xf32, #tpu.memory_space<vmem>>, vector<1x1x64xf32>
    %15 = vector.shape_cast %14 : vector<1x1x64xf32> to vector<1x64xf32>
    %16 = vector.broadcast %15 : vector<1x64xf32> to vector<8x64xf32>
    %17 = arith.addf %13, %16 : vector<8x64xf32>
    %c0_18 = arith.constant 0 : index
    %c0_19 = arith.constant 0 : index
    %c0_20 = arith.constant 0 : index
    %18 = vector.load %arg4[%c0_18, %c0_19, %c0_20] : memref<1x64x64xf32, #tpu.memory_space<vmem>>, vector<1x64x64xf32>
    %19 = vector.shape_cast %18 : vector<1x64x64xf32> to vector<64x64xf32>
    %cst_21 = arith.constant dense<0.000000e+00> : vector<8x64xf32>
    %20 = tpu.matmul %1, %19, %cst_21 {dimension_numbers = #tpu.dot_dimension_numbers<[1], [0], [0], [1], [0, 0, 1, 1], [], []>} : vector<8x64xf32>, vector<64x64xf32>, vector<8x64xf32> -> vector<8x64xf32>
    %c0_22 = arith.constant 0 : index
    %c0_23 = arith.constant 0 : index
    %c0_24 = arith.constant 0 : index
    %21 = vector.load %arg7[%c0_22, %c0_23, %c0_24] : memref<1x1x64xf32, #tpu.memory_space<vmem>>, vector<1x1x64xf32>
    %22 = vector.shape_cast %21 : vector<1x1x64xf32> to vector<1x64xf32>
    %23 = vector.broadcast %22 : vector<1x64xf32> to vector<8x64xf32>
    %24 = arith.addf %20, %23 : vector<8x64xf32>
    %25 = vector.extract_strided_slice %10 {offsets = [0, 0], sizes = [8, 8], strides = [1, 1]} : vector<8x64xf32> to vector<8x8xf32>
    %26 = vector.shape_cast %25 : vector<8x8xf32> to vector<1x8x8xf32>
    %27 = vector.extract_strided_slice %17 {offsets = [0, 0], sizes = [8, 8], strides = [1, 1]} : vector<8x64xf32> to vector<8x8xf32>
    %28 = vector.shape_cast %27 : vector<8x8xf32> to vector<1x8x8xf32>
    %29 = vector.extract_strided_slice %24 {offsets = [0, 0], sizes = [8, 8], strides = [1, 1]} : vector<8x64xf32> to vector<8x8xf32>
    %30 = vector.shape_cast %29 : vector<8x8xf32> to vector<1x8x8xf32>
    "tpu.trace_start"() <{level = 10 : i32, message = "bqd,bkd->bqk"}> : () -> ()
    %cst_25 = arith.constant dense<0.000000e+00> : vector<1x8x8xf32>
    %31 = tpu.matmul %26, %28, %cst_25 {dimension_numbers = #tpu.dot_dimension_numbers<[2], [2], [1], [1], [0, 0, 0, 1, 1, 1], [0], [0]>} : vector<1x8x8xf32>, vector<1x8x8xf32>, vector<1x8x8xf32> -> vector<1x8x8xf32>
    "tpu.trace_stop"() : () -> ()
    %cst_26 = arith.constant dense<0xFF800000> : vector<1x8xf32>
    %32 = vector.multi_reduction <maximumf>, %31, %cst_26 [2] : vector<1x8x8xf32> to vector<1x8xf32>
    %33 = vector.shape_cast %32 : vector<1x8xf32> to vector<1x8x1xf32>
    %34 = vector.broadcast %33 : vector<1x8x1xf32> to vector<1x8x8xf32>
    %35 = arith.subf %31, %34 : vector<1x8x8xf32>
    %36 = math.exp %35 : vector<1x8x8xf32>
    %cst_27 = arith.constant dense<0.000000e+00> : vector<1x8xf32>
    %37 = vector.multi_reduction <add>, %36, %cst_27 [2] : vector<1x8x8xf32> to vector<1x8xf32>
    %38 = vector.shape_cast %37 : vector<1x8xf32> to vector<1x8x1xf32>
    %39 = tpu.reciprocal %38 {approx = true} : vector<1x8x1xf32> -> vector<1x8x1xf32>
    %40 = vector.broadcast %39 : vector<1x8x1xf32> to vector<1x8x8xf32>
    %41 = arith.mulf %36, %40 : vector<1x8x8xf32>
    "tpu.trace_start"() <{level = 10 : i32, message = "bqk,bkd->bqd"}> : () -> ()
    %cst_28 = arith.constant dense<0.000000e+00> : vector<1x8x8xf32>
    %42 = tpu.matmul %41, %30, %cst_28 {dimension_numbers = #tpu.dot_dimension_numbers<[2], [1], [1], [2], [0, 0, 0, 1, 1, 2], [0], [0]>} : vector<1x8x8xf32>, vector<1x8x8xf32>, vector<1x8x8xf32> -> vector<1x8x8xf32>
    "tpu.trace_stop"() : () -> ()
    %43 = vector.shape_cast %42 : vector<1x8x8xf32> to vector<8x8xf32>
    %c0_29 = arith.constant 0 : index
    %c0_30 = arith.constant 0 : index
    %44 = vector.load %arg12[%c0_29, %c0_30] : memref<8x64xf32, #tpu.memory_space<vmem>>, vector<8x8xf32>
    tpu.vector_store %arg12[%c0_29, %c0_30], %43 {strides = array<i32>} : memref<8x64xf32, #tpu.memory_space<vmem>>, vector<8x8xf32>,
    %45 = vector.extract_strided_slice %10 {offsets = [0, 8], sizes = [8, 8], strides = [1, 1]} : vector<8x64xf32> to vector<8x8xf32>
    %46 = vector.shape_cast %45 : vector<8x8xf32> to vector<1x8x8xf32>
    %47 = vector.extract_strided_slice %17 {offsets = [0, 8], sizes = [8, 8], strides = [1, 1]} : vector<8x64xf32> to vector<8x8xf32>
    %48 = vector.shape_cast %47 : vector<8x8xf32> to vector<1x8x8xf32>
    %49 = vector.extract_strided_slice %24 {offsets = [0, 8], sizes = [8, 8], strides = [1, 1]} : vector<8x64xf32> to vector<8x8xf32>
    %50 = vector.shape_cast %49 : vector<8x8xf32> to vector<1x8x8xf32>
    "tpu.trace_start"() <{level = 10 : i32, message = "bqd,bkd->bqk"}> : () -> ()
    %cst_31 = arith.constant dense<0.000000e+00> : vector<1x8x8xf32>
    %51 = tpu.matmul %46, %48, %cst_31 {dimension_numbers = #tpu.dot_dimension_numbers<[2], [2], [1], [1], [0, 0, 0, 1, 1, 1], [0], [0]>} : vector<1x8x8xf32>, vector<1x8x8xf32>, vector<1x8x8xf32> -> vector<1x8x8xf32>
    "tpu.trace_stop"() : () -> ()
    %cst_32 = arith.constant dense<0xFF800000> : vector<1x8xf32>
    %52 = vector.multi_reduction <maximumf>, %51, %cst_32 [2] : vector<1x8x8xf32> to vector<1x8xf32>
    %53 = vector.shape_cast %52 : vector<1x8xf32> to vector<1x8x1xf32>
    %54 = vector.broadcast %53 : vector<1x8x1xf32> to vector<1x8x8xf32>
    %55 = arith.subf %51, %54 : vector<1x8x8xf32>
    %56 = math.exp %55 : vector<1x8x8xf32>
    %cst_33 = arith.constant dense<0.000000e+00> : vector<1x8xf32>
    %57 = vector.multi_reduction <add>, %56, %cst_33 [2] : vector<1x8x8xf32> to vector<1x8xf32>
    %58 = vector.shape_cast %57 : vector<1x8xf32> to vector<1x8x1xf32>
    %59 = tpu.reciprocal %58 {approx = true} : vector<1x8x1xf32> -> vector<1x8x1xf32>
    %60 = vector.broadcast %59 : vector<1x8x1xf32> to vector<1x8x8xf32>
    %61 = arith.mulf %56, %60 : vector<1x8x8xf32>
    "tpu.trace_start"() <{level = 10 : i32, message = "bqk,bkd->bqd"}> : () -> ()
    %cst_34 = arith.constant dense<0.000000e+00> : vector<1x8x8xf32>
    %62 = tpu.matmul %61, %50, %cst_34 {dimension_numbers = #tpu.dot_dimension_numbers<[2], [1], [1], [2], [0, 0, 0, 1, 1, 2], [0], [0]>} : vector<1x8x8xf32>, vector<1x8x8xf32>, vector<1x8x8xf32> -> vector<1x8x8xf32>
    "tpu.trace_stop"() : () -> ()
    %63 = vector.shape_cast %62 : vector<1x8x8xf32> to vector<8x8xf32>
    %c0_35 = arith.constant 0 : index
    %c8 = arith.constant 8 : index
    %64 = vector.load %arg12[%c0_35, %c8] : memref<8x64xf32, #tpu.memory_space<vmem>>, vector<8x8xf32>
    tpu.vector_store %arg12[%c0_35, %c8], %63 {strides = array<i32>} : memref<8x64xf32, #tpu.memory_space<vmem>>, vector<8x8xf32>,
    %65 = vector.extract_strided_slice %10 {offsets = [0, 16], sizes = [8, 8], strides = [1, 1]} : vector<8x64xf32> to vector<8x8xf32>
    %66 = vector.shape_cast %65 : vector<8x8xf32> to vector<1x8x8xf32>
    %67 = vector.extract_strided_slice %17 {offsets = [0, 16], sizes = [8, 8], strides = [1, 1]} : vector<8x64xf32> to vector<8x8xf32>
    %68 = vector.shape_cast %67 : vector<8x8xf32> to vector<1x8x8xf32>
    %69 = vector.extract_strided_slice %24 {offsets = [0, 16], sizes = [8, 8], strides = [1, 1]} : vector<8x64xf32> to vector<8x8xf32>
    %70 = vector.shape_cast %69 : vector<8x8xf32> to vector<1x8x8xf32>
    "tpu.trace_start"() <{level = 10 : i32, message = "bqd,bkd->bqk"}> : () -> ()
    %cst_36 = arith.constant dense<0.000000e+00> : vector<1x8x8xf32>
    %71 = tpu.matmul %66, %68, %cst_36 {dimension_numbers = #tpu.dot_dimension_numbers<[2], [2], [1], [1], [0, 0, 0, 1, 1, 1], [0], [0]>} : vector<1x8x8xf32>, vector<1x8x8xf32>, vector<1x8x8xf32> -> vector<1x8x8xf32>
    "tpu.trace_stop"() : () -> ()
    %cst_37 = arith.constant dense<0xFF800000> : vector<1x8xf32>
    %72 = vector.multi_reduction <maximumf>, %71, %cst_37 [2] : vector<1x8x8xf32> to vector<1x8xf32>
    %73 = vector.shape_cast %72 : vector<1x8xf32> to vector<1x8x1xf32>
    %74 = vector.broadcast %73 : vector<1x8x1xf32> to vector<1x8x8xf32>
    %75 = arith.subf %71, %74 : vector<1x8x8xf32>
    %76 = math.exp %75 : vector<1x8x8xf32>
    %cst_38 = arith.constant dense<0.000000e+00> : vector<1x8xf32>
    %77 = vector.multi_reduction <add>, %76, %cst_38 [2] : vector<1x8x8xf32> to vector<1x8xf32>
    %78 = vector.shape_cast %77 : vector<1x8xf32> to vector<1x8x1xf32>
    %79 = tpu.reciprocal %78 {approx = true} : vector<1x8x1xf32> -> vector<1x8x1xf32>
    %80 = vector.broadcast %79 : vector<1x8x1xf32> to vector<1x8x8xf32>
    %81 = arith.mulf %76, %80 : vector<1x8x8xf32>
    "tpu.trace_start"() <{level = 10 : i32, message = "bqk,bkd->bqd"}> : () -> ()
    %cst_39 = arith.constant dense<0.000000e+00> : vector<1x8x8xf32>
    %82 = tpu.matmul %81, %70, %cst_39 {dimension_numbers = #tpu.dot_dimension_numbers<[2], [1], [1], [2], [0, 0, 0, 1, 1, 2], [0], [0]>} : vector<1x8x8xf32>, vector<1x8x8xf32>, vector<1x8x8xf32> -> vector<1x8x8xf32>
    "tpu.trace_stop"() : () -> ()
    %83 = vector.shape_cast %82 : vector<1x8x8xf32> to vector<8x8xf32>
    %c0_40 = arith.constant 0 : index
    %c16 = arith.constant 16 : index
    %84 = vector.load %arg12[%c0_40, %c16] : memref<8x64xf32, #tpu.memory_space<vmem>>, vector<8x8xf32>
    tpu.vector_store %arg12[%c0_40, %c16], %83 {strides = array<i32>} : memref<8x64xf32, #tpu.memory_space<vmem>>, vector<8x8xf32>,
    %85 = vector.extract_strided_slice %10 {offsets = [0, 24], sizes = [8, 8], strides = [1, 1]} : vector<8x64xf32> to vector<8x8xf32>
    %86 = vector.shape_cast %85 : vector<8x8xf32> to vector<1x8x8xf32>
    %87 = vector.extract_strided_slice %17 {offsets = [0, 24], sizes = [8, 8], strides = [1, 1]} : vector<8x64xf32> to vector<8x8xf32>
    %88 = vector.shape_cast %87 : vector<8x8xf32> to vector<1x8x8xf32>
    %89 = vector.extract_strided_slice %24 {offsets = [0, 24], sizes = [8, 8], strides = [1, 1]} : vector<8x64xf32> to vector<8x8xf32>
    %90 = vector.shape_cast %89 : vector<8x8xf32> to vector<1x8x8xf32>
    "tpu.trace_start"() <{level = 10 : i32, message = "bqd,bkd->bqk"}> : () -> ()
    %cst_41 = arith.constant dense<0.000000e+00> : vector<1x8x8xf32>
    %91 = tpu.matmul %86, %88, %cst_41 {dimension_numbers = #tpu.dot_dimension_numbers<[2], [2], [1], [1], [0, 0, 0, 1, 1, 1], [0], [0]>} : vector<1x8x8xf32>, vector<1x8x8xf32>, vector<1x8x8xf32> -> vector<1x8x8xf32>
    "tpu.trace_stop"() : () -> ()
    %cst_42 = arith.constant dense<0xFF800000> : vector<1x8xf32>
    %92 = vector.multi_reduction <maximumf>, %91, %cst_42 [2] : vector<1x8x8xf32> to vector<1x8xf32>
    %93 = vector.shape_cast %92 : vector<1x8xf32> to vector<1x8x1xf32>
    %94 = vector.broadcast %93 : vector<1x8x1xf32> to vector<1x8x8xf32>
    %95 = arith.subf %91, %94 : vector<1x8x8xf32>
    %96 = math.exp %95 : vector<1x8x8xf32>
    %cst_43 = arith.constant dense<0.000000e+00> : vector<1x8xf32>
    %97 = vector.multi_reduction <add>, %96, %cst_43 [2] : vector<1x8x8xf32> to vector<1x8xf32>
    %98 = vector.shape_cast %97 : vector<1x8xf32> to vector<1x8x1xf32>
    %99 = tpu.reciprocal %98 {approx = true} : vector<1x8x1xf32> -> vector<1x8x1xf32>
    %100 = vector.broadcast %99 : vector<1x8x1xf32> to vector<1x8x8xf32>
    %101 = arith.mulf %96, %100 : vector<1x8x8xf32>
    "tpu.trace_start"() <{level = 10 : i32, message = "bqk,bkd->bqd"}> : () -> ()
    %cst_44 = arith.constant dense<0.000000e+00> : vector<1x8x8xf32>
    %102 = tpu.matmul %101, %90, %cst_44 {dimension_numbers = #tpu.dot_dimension_numbers<[2], [1], [1], [2], [0, 0, 0, 1, 1, 2], [0], [0]>} : vector<1x8x8xf32>, vector<1x8x8xf32>, vector<1x8x8xf32> -> vector<1x8x8xf32>
    "tpu.trace_stop"() : () -> ()
    %103 = vector.shape_cast %102 : vector<1x8x8xf32> to vector<8x8xf32>
    %c0_45 = arith.constant 0 : index
    %c24 = arith.constant 24 : index
    %104 = vector.load %arg12[%c0_45, %c24] : memref<8x64xf32, #tpu.memory_space<vmem>>, vector<8x8xf32>
    tpu.vector_store %arg12[%c0_45, %c24], %103 {strides = array<i32>} : memref<8x64xf32, #tpu.memory_space<vmem>>, vector<8x8xf32>,
    %105 = vector.extract_strided_slice %10 {offsets = [0, 32], sizes = [8, 8], strides = [1, 1]} : vector<8x64xf32> to vector<8x8xf32>
    %106 = vector.shape_cast %105 : vector<8x8xf32> to vector<1x8x8xf32>
    %107 = vector.extract_strided_slice %17 {offsets = [0, 32], sizes = [8, 8], strides = [1, 1]} : vector<8x64xf32> to vector<8x8xf32>
    %108 = vector.shape_cast %107 : vector<8x8xf32> to vector<1x8x8xf32>
    %109 = vector.extract_strided_slice %24 {offsets = [0, 32], sizes = [8, 8], strides = [1, 1]} : vector<8x64xf32> to vector<8x8xf32>
    %110 = vector.shape_cast %109 : vector<8x8xf32> to vector<1x8x8xf32>
    "tpu.trace_start"() <{level = 10 : i32, message = "bqd,bkd->bqk"}> : () -> ()
    %cst_46 = arith.constant dense<0.000000e+00> : vector<1x8x8xf32>
    %111 = tpu.matmul %106, %108, %cst_46 {dimension_numbers = #tpu.dot_dimension_numbers<[2], [2], [1], [1], [0, 0, 0, 1, 1, 1], [0], [0]>} : vector<1x8x8xf32>, vector<1x8x8xf32>, vector<1x8x8xf32> -> vector<1x8x8xf32>
    "tpu.trace_stop"() : () -> ()
    %cst_47 = arith.constant dense<0xFF800000> : vector<1x8xf32>
    %112 = vector.multi_reduction <maximumf>, %111, %cst_47 [2] : vector<1x8x8xf32> to vector<1x8xf32>
    %113 = vector.shape_cast %112 : vector<1x8xf32> to vector<1x8x1xf32>
    %114 = vector.broadcast %113 : vector<1x8x1xf32> to vector<1x8x8xf32>
    %115 = arith.subf %111, %114 : vector<1x8x8xf32>
    %116 = math.exp %115 : vector<1x8x8xf32>
    %cst_48 = arith.constant dense<0.000000e+00> : vector<1x8xf32>
    %117 = vector.multi_reduction <add>, %116, %cst_48 [2] : vector<1x8x8xf32> to vector<1x8xf32>
    %118 = vector.shape_cast %117 : vector<1x8xf32> to vector<1x8x1xf32>
    %119 = tpu.reciprocal %118 {approx = true} : vector<1x8x1xf32> -> vector<1x8x1xf32>
    %120 = vector.broadcast %119 : vector<1x8x1xf32> to vector<1x8x8xf32>
    %121 = arith.mulf %116, %120 : vector<1x8x8xf32>
    "tpu.trace_start"() <{level = 10 : i32, message = "bqk,bkd->bqd"}> : () -> ()
    %cst_49 = arith.constant dense<0.000000e+00> : vector<1x8x8xf32>
    %122 = tpu.matmul %121, %110, %cst_49 {dimension_numbers = #tpu.dot_dimension_numbers<[2], [1], [1], [2], [0, 0, 0, 1, 1, 2], [0], [0]>} : vector<1x8x8xf32>, vector<1x8x8xf32>, vector<1x8x8xf32> -> vector<1x8x8xf32>
    "tpu.trace_stop"() : () -> ()
    %123 = vector.shape_cast %122 : vector<1x8x8xf32> to vector<8x8xf32>
    %c0_50 = arith.constant 0 : index
    %c32 = arith.constant 32 : index
    %124 = vector.load %arg12[%c0_50, %c32] : memref<8x64xf32, #tpu.memory_space<vmem>>, vector<8x8xf32>
    tpu.vector_store %arg12[%c0_50, %c32], %123 {strides = array<i32>} : memref<8x64xf32, #tpu.memory_space<vmem>>, vector<8x8xf32>,
    %125 = vector.extract_strided_slice %10 {offsets = [0, 40], sizes = [8, 8], strides = [1, 1]} : vector<8x64xf32> to vector<8x8xf32>
    %126 = vector.shape_cast %125 : vector<8x8xf32> to vector<1x8x8xf32>
    %127 = vector.extract_strided_slice %17 {offsets = [0, 40], sizes = [8, 8], strides = [1, 1]} : vector<8x64xf32> to vector<8x8xf32>
    %128 = vector.shape_cast %127 : vector<8x8xf32> to vector<1x8x8xf32>
    %129 = vector.extract_strided_slice %24 {offsets = [0, 40], sizes = [8, 8], strides = [1, 1]} : vector<8x64xf32> to vector<8x8xf32>
    %130 = vector.shape_cast %129 : vector<8x8xf32> to vector<1x8x8xf32>
    "tpu.trace_start"() <{level = 10 : i32, message = "bqd,bkd->bqk"}> : () -> ()
    %cst_51 = arith.constant dense<0.000000e+00> : vector<1x8x8xf32>
    %131 = tpu.matmul %126, %128, %cst_51 {dimension_numbers = #tpu.dot_dimension_numbers<[2], [2], [1], [1], [0, 0, 0, 1, 1, 1], [0], [0]>} : vector<1x8x8xf32>, vector<1x8x8xf32>, vector<1x8x8xf32> -> vector<1x8x8xf32>
    "tpu.trace_stop"() : () -> ()
    %cst_52 = arith.constant dense<0xFF800000> : vector<1x8xf32>
    %132 = vector.multi_reduction <maximumf>, %131, %cst_52 [2] : vector<1x8x8xf32> to vector<1x8xf32>
    %133 = vector.shape_cast %132 : vector<1x8xf32> to vector<1x8x1xf32>
    %134 = vector.broadcast %133 : vector<1x8x1xf32> to vector<1x8x8xf32>
    %135 = arith.subf %131, %134 : vector<1x8x8xf32>
    %136 = math.exp %135 : vector<1x8x8xf32>
    %cst_53 = arith.constant dense<0.000000e+00> : vector<1x8xf32>
    %137 = vector.multi_reduction <add>, %136, %cst_53 [2] : vector<1x8x8xf32> to vector<1x8xf32>
    %138 = vector.shape_cast %137 : vector<1x8xf32> to vector<1x8x1xf32>
    %139 = tpu.reciprocal %138 {approx = true} : vector<1x8x1xf32> -> vector<1x8x1xf32>
    %140 = vector.broadcast %139 : vector<1x8x1xf32> to vector<1x8x8xf32>
    %141 = arith.mulf %136, %140 : vector<1x8x8xf32>
    "tpu.trace_start"() <{level = 10 : i32, message = "bqk,bkd->bqd"}> : () -> ()
    %cst_54 = arith.constant dense<0.000000e+00> : vector<1x8x8xf32>
    %142 = tpu.matmul %141, %130, %cst_54 {dimension_numbers = #tpu.dot_dimension_numbers<[2], [1], [1], [2], [0, 0, 0, 1, 1, 2], [0], [0]>} : vector<1x8x8xf32>, vector<1x8x8xf32>, vector<1x8x8xf32> -> vector<1x8x8xf32>
    "tpu.trace_stop"() : () -> ()
    %143 = vector.shape_cast %142 : vector<1x8x8xf32> to vector<8x8xf32>
    %c0_55 = arith.constant 0 : index
    %c40 = arith.constant 40 : index
    %144 = vector.load %arg12[%c0_55, %c40] : memref<8x64xf32, #tpu.memory_space<vmem>>, vector<8x8xf32>
    tpu.vector_store %arg12[%c0_55, %c40], %143 {strides = array<i32>} : memref<8x64xf32, #tpu.memory_space<vmem>>, vector<8x8xf32>,
    %145 = vector.extract_strided_slice %10 {offsets = [0, 48], sizes = [8, 8], strides = [1, 1]} : vector<8x64xf32> to vector<8x8xf32>
    %146 = vector.shape_cast %145 : vector<8x8xf32> to vector<1x8x8xf32>
    %147 = vector.extract_strided_slice %17 {offsets = [0, 48], sizes = [8, 8], strides = [1, 1]} : vector<8x64xf32> to vector<8x8xf32>
    %148 = vector.shape_cast %147 : vector<8x8xf32> to vector<1x8x8xf32>
    %149 = vector.extract_strided_slice %24 {offsets = [0, 48], sizes = [8, 8], strides = [1, 1]} : vector<8x64xf32> to vector<8x8xf32>
    %150 = vector.shape_cast %149 : vector<8x8xf32> to vector<1x8x8xf32>
    "tpu.trace_start"() <{level = 10 : i32, message = "bqd,bkd->bqk"}> : () -> ()
    %cst_56 = arith.constant dense<0.000000e+00> : vector<1x8x8xf32>
    %151 = tpu.matmul %146, %148, %cst_56 {dimension_numbers = #tpu.dot_dimension_numbers<[2], [2], [1], [1], [0, 0, 0, 1, 1, 1], [0], [0]>} : vector<1x8x8xf32>, vector<1x8x8xf32>, vector<1x8x8xf32> -> vector<1x8x8xf32>
    "tpu.trace_stop"() : () -> ()
    %cst_57 = arith.constant dense<0xFF800000> : vector<1x8xf32>
    %152 = vector.multi_reduction <maximumf>, %151, %cst_57 [2] : vector<1x8x8xf32> to vector<1x8xf32>
    %153 = vector.shape_cast %152 : vector<1x8xf32> to vector<1x8x1xf32>
    %154 = vector.broadcast %153 : vector<1x8x1xf32> to vector<1x8x8xf32>
    %155 = arith.subf %151, %154 : vector<1x8x8xf32>
    %156 = math.exp %155 : vector<1x8x8xf32>
    %cst_58 = arith.constant dense<0.000000e+00> : vector<1x8xf32>
    %157 = vector.multi_reduction <add>, %156, %cst_58 [2] : vector<1x8x8xf32> to vector<1x8xf32>
    %158 = vector.shape_cast %157 : vector<1x8xf32> to vector<1x8x1xf32>
    %159 = tpu.reciprocal %158 {approx = true} : vector<1x8x1xf32> -> vector<1x8x1xf32>
    %160 = vector.broadcast %159 : vector<1x8x1xf32> to vector<1x8x8xf32>
    %161 = arith.mulf %156, %160 : vector<1x8x8xf32>
    "tpu.trace_start"() <{level = 10 : i32, message = "bqk,bkd->bqd"}> : () -> ()
    %cst_59 = arith.constant dense<0.000000e+00> : vector<1x8x8xf32>
    %162 = tpu.matmul %161, %150, %cst_59 {dimension_numbers = #tpu.dot_dimension_numbers<[2], [1], [1], [2], [0, 0, 0, 1, 1, 2], [0], [0]>} : vector<1x8x8xf32>, vector<1x8x8xf32>, vector<1x8x8xf32> -> vector<1x8x8xf32>
    "tpu.trace_stop"() : () -> ()
    %163 = vector.shape_cast %162 : vector<1x8x8xf32> to vector<8x8xf32>
    %c0_60 = arith.constant 0 : index
    %c48 = arith.constant 48 : index
    %164 = vector.load %arg12[%c0_60, %c48] : memref<8x64xf32, #tpu.memory_space<vmem>>, vector<8x8xf32>
    tpu.vector_store %arg12[%c0_60, %c48], %163 {strides = array<i32>} : memref<8x64xf32, #tpu.memory_space<vmem>>, vector<8x8xf32>,
    %165 = vector.extract_strided_slice %10 {offsets = [0, 56], sizes = [8, 8], strides = [1, 1]} : vector<8x64xf32> to vector<8x8xf32>
    %166 = vector.shape_cast %165 : vector<8x8xf32> to vector<1x8x8xf32>
    %167 = vector.extract_strided_slice %17 {offsets = [0, 56], sizes = [8, 8], strides = [1, 1]} : vector<8x64xf32> to vector<8x8xf32>
    %168 = vector.shape_cast %167 : vector<8x8xf32> to vector<1x8x8xf32>
    %169 = vector.extract_strided_slice %24 {offsets = [0, 56], sizes = [8, 8], strides = [1, 1]} : vector<8x64xf32> to vector<8x8xf32>
    %170 = vector.shape_cast %169 : vector<8x8xf32> to vector<1x8x8xf32>
    "tpu.trace_start"() <{level = 10 : i32, message = "bqd,bkd->bqk"}> : () -> ()
    %cst_61 = arith.constant dense<0.000000e+00> : vector<1x8x8xf32>
    %171 = tpu.matmul %166, %168, %cst_61 {dimension_numbers = #tpu.dot_dimension_numbers<[2], [2], [1], [1], [0, 0, 0, 1, 1, 1], [0], [0]>} : vector<1x8x8xf32>, vector<1x8x8xf32>, vector<1x8x8xf32> -> vector<1x8x8xf32>
    "tpu.trace_stop"() : () -> ()
    %cst_62 = arith.constant dense<0xFF800000> : vector<1x8xf32>
    %172 = vector.multi_reduction <maximumf>, %171, %cst_62 [2] : vector<1x8x8xf32> to vector<1x8xf32>
    %173 = vector.shape_cast %172 : vector<1x8xf32> to vector<1x8x1xf32>
    %174 = vector.broadcast %173 : vector<1x8x1xf32> to vector<1x8x8xf32>
    %175 = arith.subf %171, %174 : vector<1x8x8xf32>
    %176 = math.exp %175 : vector<1x8x8xf32>
    %cst_63 = arith.constant dense<0.000000e+00> : vector<1x8xf32>
    %177 = vector.multi_reduction <add>, %176, %cst_63 [2] : vector<1x8x8xf32> to vector<1x8xf32>
    %178 = vector.shape_cast %177 : vector<1x8xf32> to vector<1x8x1xf32>
    %179 = tpu.reciprocal %178 {approx = true} : vector<1x8x1xf32> -> vector<1x8x1xf32>
    %180 = vector.broadcast %179 : vector<1x8x1xf32> to vector<1x8x8xf32>
    %181 = arith.mulf %176, %180 : vector<1x8x8xf32>
    "tpu.trace_start"() <{level = 10 : i32, message = "bqk,bkd->bqd"}> : () -> ()
    %cst_64 = arith.constant dense<0.000000e+00> : vector<1x8x8xf32>
    %182 = tpu.matmul %181, %170, %cst_64 {dimension_numbers = #tpu.dot_dimension_numbers<[2], [1], [1], [2], [0, 0, 0, 1, 1, 2], [0], [0]>} : vector<1x8x8xf32>, vector<1x8x8xf32>, vector<1x8x8xf32> -> vector<1x8x8xf32>
    "tpu.trace_stop"() : () -> ()
    %183 = vector.shape_cast %182 : vector<1x8x8xf32> to vector<8x8xf32>
    %c0_65 = arith.constant 0 : index
    %c56 = arith.constant 56 : index
    %184 = vector.load %arg12[%c0_65, %c56] : memref<8x64xf32, #tpu.memory_space<vmem>>, vector<8x8xf32>
    tpu.vector_store %arg12[%c0_65, %c56], %183 {strides = array<i32>} : memref<8x64xf32, #tpu.memory_space<vmem>>, vector<8x8xf32>,
    %c0_66 = arith.constant 0 : index
    %c0_67 = arith.constant 0 : index
    %185 = vector.load %arg11[%c0_66, %c0_67] : memref<8x64xf32, #tpu.memory_space<vmem>>, vector<8x64xf32>
    %c0_68 = arith.constant 0 : index
    %c0_69 = arith.constant 0 : index
    %186 = vector.load %arg12[%c0_68, %c0_69] : memref<8x64xf32, #tpu.memory_space<vmem>>, vector<8x64xf32>
    %c0_70 = arith.constant 0 : index
    %c0_71 = arith.constant 0 : index
    %c0_72 = arith.constant 0 : index
    %187 = vector.load %arg8[%c0_70, %c0_71, %c0_72] : memref<1x64x64xf32, #tpu.memory_space<vmem>>, vector<1x64x64xf32>
    %188 = vector.shape_cast %187 : vector<1x64x64xf32> to vector<64x64xf32>
    %cst_73 = arith.constant dense<0.000000e+00> : vector<8x64xf32>
    %189 = tpu.matmul %186, %188, %cst_73 {dimension_numbers = #tpu.dot_dimension_numbers<[1], [0], [0], [1], [0, 0, 1, 1], [], []>} : vector<8x64xf32>, vector<64x64xf32>, vector<8x64xf32> -> vector<8x64xf32>
    %190 = arith.addf %185, %189 : vector<8x64xf32>
    %c0_74 = arith.constant 0 : index
    %c0_75 = arith.constant 0 : index
    %191 = vector.load %arg11[%c0_74, %c0_75] : memref<8x64xf32, #tpu.memory_space<vmem>>, vector<8x64xf32>
    tpu.vector_store %arg11[%c0_74, %c0_75], %190 {strides = array<i32>} : memref<8x64xf32, #tpu.memory_space<vmem>>, vector<8x64xf32>,
    %c0_76 = arith.constant 0 : index
    %c0_77 = arith.constant 0 : index
    %192 = vector.load %arg11[%c0_76, %c0_77] : memref<8x64xf32, #tpu.memory_space<vmem>>, vector<8x64xf32>
    %c0_78 = arith.constant 0 : index
    %c0_79 = arith.constant 0 : index
    %193 = vector.load %arg9[%c0_78, %c0_79] : memref<1x64xf32, #tpu.memory_space<vmem>>, vector<1x64xf32>
    %194 = vector.broadcast %193 : vector<1x64xf32> to vector<8x64xf32>
    %195 = arith.addf %192, %194 : vector<8x64xf32>
    %196 = vector.shape_cast %195 : vector<8x64xf32> to vector<1x8x64xf32>
    %c0_80 = arith.constant 0 : index
    %c0_81 = arith.constant 0 : index
    %c0_82 = arith.constant 0 : index
    %197 = vector.load %arg10[%c0_80, %c0_81, %c0_82] : memref<1x8x64xf32, #tpu.memory_space<vmem>>, vector<1x8x64xf32>
    tpu.vector_store %arg10[%c0_80, %c0_81, %c0_82], %196 {strides = array<i32>} : memref<1x8x64xf32, #tpu.memory_space<vmem>>, vector<1x8x64xf32>,
    return
  }
  func.func @transform_0(%arg0: i32) -> (i32, i32, i32) {
    %c0_i32 = arith.constant 0 : i32
    %c0_i32_0 = arith.constant 0 : i32
    %c0_i32_1 = arith.constant 0 : i32
    return %arg0, %c0_i32, %c0_i32_0 : i32, i32, i32
  }
  func.func @transform_1(%arg0: i32) -> (i32, i32, i32) {
    %c0_i32 = arith.constant 0 : i32
    %c0_i32_0 = arith.constant 0 : i32
    %c0_i32_1 = arith.constant 0 : i32
    %c0_i32_2 = arith.constant 0 : i32
    return %c0_i32, %c0_i32_0, %c0_i32_1 : i32, i32, i32
  }
  func.func @transform_2(%arg0: i32) -> (i32, i32, i32) {
    %c0_i32 = arith.constant 0 : i32
    %c0_i32_0 = arith.constant 0 : i32
    %c0_i32_1 = arith.constant 0 : i32
    %c0_i32_2 = arith.constant 0 : i32
    return %c0_i32, %c0_i32_0, %c0_i32_1 : i32, i32, i32
  }
  func.func @transform_3(%arg0: i32) -> (i32, i32, i32) {
    %c0_i32 = arith.constant 0 : i32
    %c0_i32_0 = arith.constant 0 : i32
    %c0_i32_1 = arith.constant 0 : i32
    %c0_i32_2 = arith.constant 0 : i32
    return %c0_i32, %c0_i32_0, %c0_i32_1 : i32, i32, i32
  }
  func.func @transform_4(%arg0: i32) -> (i32, i32, i32) {
    %c0_i32 = arith.constant 0 : i32
    %c0_i32_0 = arith.constant 0 : i32
    %c0_i32_1 = arith.constant 0 : i32
    %c0_i32_2 = arith.constant 0 : i32
    return %c0_i32, %c0_i32_0, %c0_i32_1 : i32, i32, i32
  }
  func.func @transform_5(%arg0: i32) -> (i32, i32, i32) {
    %c0_i32 = arith.constant 0 : i32
    %c0_i32_0 = arith.constant 0 : i32
    %c0_i32_1 = arith.constant 0 : i32
    %c0_i32_2 = arith.constant 0 : i32
    return %c0_i32, %c0_i32_0, %c0_i32_1 : i32, i32, i32
  }
  func.func @transform_6(%arg0: i32) -> (i32, i32, i32) {
    %c0_i32 = arith.constant 0 : i32
    %c0_i32_0 = arith.constant 0 : i32
    %c0_i32_1 = arith.constant 0 : i32
    %c0_i32_2 = arith.constant 0 : i32
    return %c0_i32, %c0_i32_0, %c0_i32_1 : i32, i32, i32
  }
  func.func @transform_7(%arg0: i32) -> (i32, i32, i32) {
    %c0_i32 = arith.constant 0 : i32
    %c0_i32_0 = arith.constant 0 : i32
    %c0_i32_1 = arith.constant 0 : i32
    %c0_i32_2 = arith.constant 0 : i32
    return %c0_i32, %c0_i32_0, %c0_i32_1 : i32, i32, i32
  }
  func.func @transform_8(%arg0: i32) -> (i32, i32) {
    %c0_i32 = arith.constant 0 : i32
    %c0_i32_0 = arith.constant 0 : i32
    %c0_i32_1 = arith.constant 0 : i32
    return %c0_i32, %c0_i32_0 : i32, i32
  }
  func.func @transform_9(%arg0: i32) -> (i32, i32, i32) {
    %c0_i32 = arith.constant 0 : i32
    %c0_i32_0 = arith.constant 0 : i32
    %c0_i32_1 = arith.constant 0 : i32
    return %arg0, %c0_i32, %c0_i32_0 : i32, i32, i32
  }
}

</mosaic_0001>

<bundles_post_ra>
// kernel: tpu_custom_call.1
= control target key start
LH: loop header
LB: loop body
LE: loop exit
PB: predicated region body
PF: predicated region fallthrough
CT: control target
= control target key end

     0   :  { %s2006_s0 = inlined_call_operand.hbm [shape: f32[2,8,64], index: 0, kind: input, shape index: {}]   ;;  %s2007_s1 = inlined_call_operand.hbm [shape: f32[1,64,64], index: 1, kind: input, shape index: {}]   ;;  %s2008_s2 = inlined_call_operand.hbm [shape: f32[1,64,64], index: 2, kind: input, shape index: {}]   ;;  %s2009_s3 = inlined_call_operand.hbm [shape: f32[1,64,64], index: 3, kind: input, shape index: {}]   ;;  %s2010_s4 = inlined_call_operand.vmem [shape: f32[1,1,64], index: 4, kind: input, shape index: {}]   ;;  %s2011_s5 = inlined_call_operand.vmem [shape: f32[1,1,64], index: 5, kind: input, shape index: {}]   ;;  %s2012_s6 = inlined_call_operand.vmem [shape: f32[1,1,64], index: 6, kind: input, shape index: {}]   ;;  %s2013_s7 = inlined_call_operand.hbm [shape: f32[1,64,64], index: 7, kind: input, shape index: {}]   ;;  %s2014_s8 = inlined_call_operand.vmem [shape: f32[1,64], index: 8, kind: input, shape index: {}]   ;;  %s2015_s9 = inlined_call_operand.hbm [shape: f32[2,8,64], index: 9, kind: output, shape index: {}]  }
   0x1   :  { %2016 = sst [smem:[#allocation18_spill]] %s2007_s1 }
   0x2   :  { %2017 = sst [smem:[#allocation19_spill]] %s2008_s2 }
   0x3   :  { %2018 = sst [smem:[#allocation20_spill]] %s2009_s3 }
   0x4   :  { %2019 = sst [smem:[#allocation21_spill]] %s2013_s7 }
   0x5   :  { %14 = vsyncpa [#allocation5], 0 }
   0x6   :  { %16 = vsyncpa [#allocation5 + $0x1], 0 }
   0x7   :  { %17 = vsyncpa [#allocation8], 0 }
   0x8   :  { %18 = vsyncpa [#allocation11], 0 }
   0x9   :  { %19 = vsyncpa [#allocation6], 0 }
   0xa   :  { %21 = vsyncpa [#allocation6 + $0x1], 0  ;;  %s1729_s30 = smov 0   ;;  %s1731_s10 = smov 0  }
   0xb   :  { %s1733_s11 = smov 0   ;;  %s1735_s12 = smov 0  }
   0xc LB: > { %s2020_s1 = sld [smem:[#allocation18_spill]]  ;;  %s1753_s16 = sadd.s32 4294967295, %s1656_s12   ;;  %s1656_s12 = sphi %s1735_s12, %s2035_s12   ;;  %s1652_s11 = sphi %s1733_s11, %s2034_s11   ;;  %s1648_s10 = sphi %s1731_s10, %s2033_s10   ;;  %s1644_s30 = sphi %s1729_s30, %s2032_s30  }
   0xd   : > { %p1245_p0 = scmp.ge.s32.totalorder %s1656_s12, 1  ;;  %p48_p1 = scmp.eq.s32.totalorder %s1753_s16, 0 }
   0xe   : > { %p252_p2 = scmp.lt.s32.totalorder %s1656_s12, 3  ;;  %s1658_s18 = smov [#allocation7]  }
   0xf   : > { %s265_s19 = sshll.u32 %s1658_s18, 4  ;;  %s2022_s3 = sld [smem:[#allocation20_spill]]  ;;  %s266_s19 = int_to_ptr.vmem [resolvable:$true] %s265_s19 }
  0x10   : > { %p1758_p3 = pnand %p1245_p0, %p252_p2  ;;  %s2024_s2 = sld [smem:[#allocation19_spill]] }
  0x11   : > { %s1659_s27 = smov [#allocation10]   ;;  %s1660_s29 = smov 128  }
  0x12   : > { %s263_s15 = sshll.u32 %s2020_s1, 4  ;;  %p1312_p4 = pneg %p1758_p3  ;;  %s264_s15 = int_to_ptr.hbm [resolvable:$true] %s263_s15 }
  0x13   : > { %s293_s28 = sshll.u32 %s1659_s27, 4  ;;  %s1661_s13 = smov 8   ;;  %s294_s28 = int_to_ptr.vmem [resolvable:$true] %s293_s28 }
  0x14   : > { %p1770_p6 = pnand %p1312_p4, %p48_p1  ;;  %s2025_s7 = sld [smem:[#allocation21_spill]] }
  0x15   : > { %s291_s22 = sshll.u32 %s2022_s3, 4  ;;  %s1662_s21 = smov [#allocation9]   ;;  %s292_s22 = int_to_ptr.hbm [resolvable:$true] %s291_s22 }
  0x16   : > { %s277_s26 = sshll.u32 %s2024_s2, 4  ;;  %s279_s24 = sshll.u32 %s1662_s21, 4  ;;  %s278_s26 = int_to_ptr.hbm [resolvable:$true] %s277_s26  ;;  %s280_s24 = int_to_ptr.vmem [resolvable:$true] %s279_s24 }
  0x17   : > { %1315 = dma.hbm_to_vmem [thread:$0]  (!%p1770_p6), %s264_s15, 1024, %s266_s19, [#allocation8], %s1660_s29, %s1660_s29, %s1661_s13  }
  0x18   : > { %1321 = dma.hbm_to_vmem [thread:$0]  (!%p1770_p6), %s292_s22, 1024, %s294_s28, [#allocation11], %s1660_s29, %s1660_s29, %s1661_s13  }
  0x19   : > { %1318 = dma.hbm_to_vmem [thread:$0]  (!%p1770_p6), %s278_s26, 1024, %s280_s24, [#allocation8], %s1660_s29, %s1660_s29, %s1661_s13  }
  0x1a   : > { %s314_s20 = sshll.u32 %s2025_s7, 4  ;;  %s1663_s15 = smov [#allocation12]   ;;  %s315_s20 = int_to_ptr.hbm [resolvable:$true] %s314_s20 }
  0x1b   : > { %s316_s19 = sshll.u32 %s1663_s15, 4  ;;  %s1244_s22 = sadd.s32 4294967294, %s1656_s12   ;;  %s317_s19 = int_to_ptr.vmem [resolvable:$true] %s316_s19 }
  0x1c   : > { %1324 = dma.hbm_to_vmem [thread:$0]  (!%p1770_p6), %s315_s20, 1024, %s317_s19, [#allocation11], %s1660_s29, %s1660_s29, %s1661_s13  }
  0x1d   : > { %s1790_s25 = sadd.s32 1, %s1656_s12   ;;  %s34_s28 = sadd.s32 1, %s1652_s11 }
  0x1e   : > { %s31_s27 = ssub.s32 %s1656_s12, %s1790_s25  ;;  %p41_p8 = scmp.ne.s32.totalorder %s1652_s11, %s1648_s10 }
  0x1f   : > { %p32_p7 = scmp.eq.s32.totalorder %s31_s27, 0  ;;  %p42_p9 = scmp.eq.s32.totalorder %s1656_s12, 0 }
  0x20   : > { %p47_p10 = scmp.ne.s32.totalorder %s1648_s10, %s1644_s30  ;;  %p239_p13 = scmp.eq.s32.totalorder %s1753_s16, 1 }
  0x21   : > { %s1801_s26 = scalar_select %p32_p7, %s1652_s11, %s34_s28  }
  0x22   : > { %p1803_p11 = por %p42_p9, %p41_p8  ;;  %p1809_p12 = por %p48_p1, %p47_p10 }
  0x23   : > { %p245_p0 = scmp.eq.s32.totalorder %s1244_s22, 1  ;;  %p1337_p2 = scmp.lt.s32.totalorder %s1656_s12, 2 }
  0x24   : > { %s333_s29 = sand.u32 1, %s1652_s11   ;;  %p1816_p4 = por %p239_p13, %p41_p8 }
  0x25   : > { %p1820_p6 = por %p245_p0, %p47_p10  ;;  %s1251_s20 = sshll.u32 %s333_s29, 3 }
  0x26   : > { %s1252_s21 = sshll.u32 %s1656_s12, 3  ;;  %s337_s27 = scalar_lea.vmem [#allocation4], %s1251_s20 }
  0x27   : > { %s341_s19 = scalar_lea.hbm %s2006_s0, %s1252_s21  ;;  %s345_s28 = sshll.u32 %s337_s27, 4  ;;  %s346_s28 = int_to_ptr.vmem [resolvable:$true] %s345_s28 }
  0x28   : > { %s343_s1 = sshll.u32 %s341_s19, 4  ;;  %p1830_p7 = pnand %p1337_p2, %p1803_p11  ;;  %s344_s1 = int_to_ptr.hbm [resolvable:$true] %s343_s1 }
  0x29   : > { %s334_s2 = scalar_lea.sflag [#allocation5], %s333_s29  ;;  %s1552_s3 = sshra.s32 %s344_s1, 4  ;;  %s1553_s3 = int_to_ptr.hbm [resolvable:$true] %s1552_s3 }
  0x2a   : > { %s1554_s7 = scalar_lea.hbm %s1553_s3, 8  ;;  %p1556_p9 = pneg %p1830_p7 }
  0x2b   : > { %p1555_p8 = scmp.ne.s32.totalorder %s1553_s3, %s1554_s7  ;;  %s1559_s24 = scalar_lea.hbm %s2006_s0, 16 }
  0x2c   : > { %p1560_p11 = scmp.lt.s32.totalorder %s1553_s3, %s2006_s0  ;;  %p1561_p0 = scmp.lt.s32.totalorder %s1559_s24, %s1554_s7 }
  0x2d   : > { %p1557_p10 = pnand %p1556_p9, %p1555_p8 }
  0x2e   : > { %p1562_p2 = por %p1561_p0, %p1560_p11 }
  0x2f   : > { %p1558_p13 = pneg %p1557_p10 }
  0x31   : > { %p1563_p5 = pnand %p1562_p2, %p1558_p13 }
  0x33   : > { %1566 = shalt.err (!%p1563_p5)
}
  0x34   : > { %1328 = dma.hbm_to_vmem [thread:$0]  (!%p1830_p7), %s344_s1, 128, %s346_s28, %s334_s2  }
  0x35   : > { %354 = sbr.rel (%p1758_p3) target bundleno = 1451 (0x5ab), region = 56  ;;  %s1847_s29 = sand.u32 (!%p1758_p3), 1, %s1648_s10  }
  0x36   : > { %s1254_s19 = sshll.u32 (!%p1758_p3), %s1847_s29, 3  ;;  %s357_s27 = scalar_lea.sflag (!%p1758_p3), [#allocation5], %s1847_s29 }
  0x37   : > { %s1853_s3 = scalar_lea.vmem (!%p1758_p3), [#allocation4], %s1254_s19 }
  0x3a   : > { %1627 = dma.done.wait (%p1809_p12), %s357_s27, 128  }
  0x3b   : > { %1629 = vsyncadd (%p1809_p12), %s357_s27, 4294967168 }
  0x3c   : > { %1631 = dma.done.wait (%p48_p1), [#allocation8], 2048  }
  0x3d   : > { %1633 = vsyncadd (%p48_p1), [#allocation8], 4294965248 }
  0x3e   : > { %1635 = dma.done.wait (%p48_p1), [#allocation11], 2048  }
  0x3f   : > { %1637 = vsyncadd (%p48_p1), [#allocation11], 4294965248  ;;  %v426_v0 = vld [vmem:[#allocation7 + $0x38] sm:$0xff]  ;;  %v425_v2 = vld [vmem:[#allocation7 + $0x30] sm:$0xff]  ;;  %vm417_vm0 = vcmask 523264   ;;  %vm518_vm1 = vcmask 64512  }
  0x40   : > { %v461_v1 = vld [vmem:[#allocation9 + $0x38] sm:$0xff]  ;;  %442 = vmatpush.msra.mxu0 %v426_v0  ;;  %v460_v3 = vld [vmem:[#allocation9 + $0x30] sm:$0xff]  ;;  %v424_v4 = vld [vmem:[#allocation7 + $0x28] sm:$0xff]  ;;  %s1664_s23 = smov 120   ;;  %s1665_s28 = smov 112   ;;  %vm650_vm2 = vcmask 130112  }
  0x41   : > { %474 = vmatpush.msra.mxu1 %v461_v1  ;;  %v459_v5 = vld [vmem:[#allocation9 + $0x28] sm:$0xff]  ;;  %v423_v6 = vld [vmem:[#allocation7 + $0x20] sm:$0xff]  ;;  %v493_v8 = vld [vmem:[#allocation10 + $0x38] sm:$0xff]  ;;  %s1666_s22 = smov 104   ;;  %s1667_s20 = smov 96   ;;  %vm721_vm3 = vcmask 195712  }
  0x42   : > { %443 = vmatpush.msra.mxu0 %v425_v2  ;;  %v458_v7 = vld [vmem:[#allocation9 + $0x20] sm:$0xff]  ;;  %v422_v9 = vld [vmem:[#allocation7 + $0x18] sm:$0xff]  ;;  %506 = vmatpush.msra.mxu2 %v493_v8  ;;  %v492_v11 = vld [vmem:[#allocation10 + $0x30] sm:$0xff]  ;;  %s1668_s21 = smov 88   ;;  %s1669_s24 = smov 80   ;;  %vm792_vm4 = vcmask 261312  }
  0x43   : > { %475 = vmatpush.msra.mxu1 %v460_v3  ;;  %v457_v10 = vld [vmem:[#allocation9 + $0x18] sm:$0xff]  ;;  %v421_v12 = vld [vmem:[#allocation7 + $0x10] sm:$0xff]  ;;  %v491_v13 = vld [vmem:[#allocation10 + $0x28] sm:$0xff]  ;;  %s1670_s15 = smov 72   ;;  %s1672_s1 = smov 8   ;;  %vm863_vm5 = vcmask 326912  }
  0x44   : > { %444 = vmatpush.msra.mxu0 %v424_v4  ;;  %v456_v14 = vld [vmem:[#allocation9 + $0x10] sm:$0xff]  ;;  %507 = vmatpush.msra.mxu2 %v492_v11  ;;  %v490_v15 = vld [vmem:[#allocation10 + $0x20] sm:$0xff]  ;;  %v420_v16 = vld [vmem:[#allocation7 + $0x8] sm:$0xff]  ;;  %s1673_s2 = smov 24   ;;  %s1674_s7 = smov 32   ;;  %vm934_vm6 = vcmask 392512  }
  0x45   : > { %476 = vmatpush.msra.mxu1 %v459_v5  ;;  %v455_v17 = vld [vmem:[#allocation9 + $0x8] sm:$0xff]  ;;  %v489_v18 = vld [vmem:[#allocation10 + $0x18] sm:$0xff]  ;;  %v419_v19 = vld [vmem:[#allocation7] sm:$0xff]  ;;  %s1675_s17 = smov 40   ;;  %vm1005_vm7 = vcmask 458112   ;;  %vm1076_vm8 = vcmask 523712  }
  0x46   : > { %445 = vmatpush.msra.mxu0 %v423_v6  ;;  %508 = vmatpush.msra.mxu2 %v491_v13  ;;  %v454_v20 = vld [vmem:[#allocation9] sm:$0xff]  ;;  %v416_v21 = vld [vmem:[%s1853_s3] sm:$0xff]  ;;  %v487_v23 = vld [vmem:[#allocation10 + $0x8] sm:$0xff]  ;;  %s1671_s3 = smov 16   ;;  %s415_s27 = scalar_lea.vmem [#allocation13], %s1254_s19 }
  0x47   : > { %477 = vmatpush.msra.mxu1 %v458_v7  ;;  %v488_v22 = vld [vmem:[#allocation10 + $0x10] sm:$0xff]  ;;  %v486_v24 = vld [vmem:[#allocation10] sm:$0xff]  ;;  %s1602_s19 = scalar_lea.hbm %s2015_s9, 16 }
  0x48   : > { %446 = vmatpush.msra.mxu0 %v422_v9  ;;  %509 = vmatpush.msra.mxu2 %v490_v15  ;;  %v1396_v25 = vld [vmem:[%s2010_s4] ss:$0 sm:$0xff] }
  0x49   : > { %478 = vmatpush.msra.mxu1 %v457_v10  ;;  %v1397_v26 = vld [vmem:[%s2011_s5] ss:$0 sm:$0xff] }
  0x4a   : > { %447 = vmatpush.msra.mxu0 %v421_v12  ;;  %510 = vmatpush.msra.mxu2 %v489_v18  ;;  %v1398_v31 = vld [vmem:[%s2012_s6] ss:$0 sm:$0xff] }
  0x4b   : > { %479 = vmatpush.msra.mxu1 %v456_v14 }
  0x4c   : > { %448 = vmatpush.msra.mxu0 %v420_v16  ;;  %511 = vmatpush.msra.mxu2 %v488_v22 }
  0x4d   : > { %480 = vmatpush.msra.mxu1 %v455_v17 }
  0x4e   : > { %449 = vmatpush.msra.mxu0 %v419_v19  ;;  %512 = vmatpush.msra.mxu2 %v487_v23 }
  0x4f   : > { %481 = vmatpush.msra.mxu1 %v454_v20  ;;  %1260 = vmatmul.msk.f32.vlgmr.msra.gmra.mxu0 %vm417_vm0, %v416_v21 }
  0x50   : > { %1261 = vmatmul.msk.f32.vlgmr.msra.gmra.mxu1 %vm417_vm0, %v416_v21  ;;  %513 = vmatpush.msra.mxu2 %v486_v24 }
  0x51   : > { %1262 = vmatmul.msk.f32.vlgmr.msra.gmra.mxu2 %vm417_vm0, %v416_v21 }
  0xcc   : > { %v451_v27 = vpop.f32.mrf.mxu0 }
  0xcd   : > { %v483_v28 = vpop.f32.mrf.mxu1  ;;  %v452_v29 = vadd.f32 %v1396_v25, %v451_v27 }
  0xce   : > { %v484_v30 = vadd.f32 %v1397_v26, %v483_v28 }
  0xcf   : > { %580 = vrot.lane.b32.xlu2 %v452_v29, %s1664_s23 }
  0xd0   : > { %582 = vrot.lane.b32.xlu1 %v484_v30, %s1664_s23  ;;  %1263 = vmatpush.xpose.msk.msra.mxu3 %vm518_vm1, %v484_v30 }
  0xd3   : > { %1264 = vmatmul.msk.f32.vlgmr.msra.gmra.mxu3 %vm518_vm1, %v452_v29 }
  0xd4   : > { %v515_v32 = vpop.f32.mrf.mxu2 }
  0xd5   : > { %v1894_v33 = vadd.f32 %v1398_v31, %v515_v32 }
  0xd7   : > { %652 = vrot.lane.b32.xlu2 %v452_v29, %s1665_s28  ;;  %574 = vmatpush.msrb.mxu3 %v1894_v33 }
  0xd8   : > { %654 = vrot.lane.b32.xlu1 %v484_v30, %s1665_s28 }
  0xdf   : > { %796 = vrot.lane.b32.xlu2 %v484_v30, %s1667_s20 }
  0xe0   : > { %723 = vrot.lane.b32.xlu1 %v452_v29, %s1666_s22 }
  0xe7   : > { %794 = vrot.lane.b32.xlu2 %v452_v29, %s1667_s20 }
  0xe8   : > { %867 = vrot.lane.b32.xlu1 %v484_v30, %s1668_s21 }
  0xef   : > { %938 = vrot.lane.b32.xlu2 %v484_v30, %s1669_s24 }
  0xf0   : > { %865 = vrot.lane.b32.xlu1 %v452_v29, %s1668_s21 }
  0xf7   : > { %1007 = vrot.lane.b32.xlu2 %v452_v29, %s1670_s15 }
  0xf8   : > { %936 = vrot.lane.b32.xlu1 %v452_v29, %s1669_s24 }
 0x129   : > { %v581_v34 = vpop.permute.xlu2 %580 }
 0x131   : > { %v653_v35 = vpop.permute.xlu2 %652 }
 0x139   : > { %v797_v36 = vpop.permute.xlu2 %796 }
 0x13a   : > { %1275 = vmatpush.xpose.msk.msrb.mxu1 %vm518_vm1, %v797_v36 }
 0x141   : > { %v795_v38 = vpop.permute.xlu2 %794 }
 0x142   : > { %v583_v37 = vpop.permute.xlu1 %582  ;;  %1276 = vmatmul.msk.f32.vlgmr.msrb.gmra.mxu1 %vm518_vm1, %v795_v38 }
 0x143   : > { %1266 = vmatpush.xpose.msk.msra.mxu3 %vm518_vm1, %v583_v37 }
 0x149   : > { %v939_v40 = vpop.permute.xlu2 %938 }
 0x14a   : > { %v655_v39 = vpop.permute.xlu1 %654  ;;  %1281 = vmatpush.xpose.msk.msra.mxu1 %vm518_vm1, %v939_v40 }
 0x14b   : > { %1269 = vmatpush.xpose.msk.msrb.mxu2 %vm518_vm1, %v655_v39 }
 0x14e   : > { %1270 = vmatmul.msk.f32.vlgmr.msrb.gmra.mxu2 %vm518_vm1, %v653_v35 }
 0x151   : > { %v1008_v4 = vpop.permute.xlu2 %1007 }
 0x152   : > { %v724_v41 = vpop.permute.xlu1 %723 }
 0x156   : > { %v542_v42 = vpop.f32.mrf.mxu3 }
 0x157   : > { %v545_v43 = vsel %vm518_vm1, %v542_v42, -inf }
 0x158   : > { %546 = vmax.xlane.f32.xlu0 %v545_v43 }
 0x15a   : > { %v868_v44 = vpop.permute.xlu1 %867 }
 0x162   : > { %v866_v45 = vpop.permute.xlu1 %865 }
 0x16a   : > { %v937_v46 = vpop.permute.xlu1 %936 }
 0x16b   : > { %1282 = vmatmul.msk.f32.vlgmr.msra.gmra.mxu1 %vm518_vm1, %v937_v46 }
 0x16c   : > { %725 = vrot.lane.b32.xlu0 %v484_v30, %s1666_s22 }
 0x1bf   : > { %v819_v54 = vpop.f32.mrf.mxu1 }
 0x1c0   : > { %v822_v57 = vsel %vm518_vm1, %v819_v54, -inf }
 0x1cb   : > { %v547_v47 = vpop.xlane.xlu0 %546 }
 0x1cc   : > { %v548_v48 = vsub.f32 %v542_v42, %v547_v47 }
 0x1ce   : > { %v549_v49 = vmul.f32 1.442695, %v548_v48 }
 0x1d0   : > { %1400 = vpow2.f32 %v549_v49 }
 0x1d1   : > { %v677_v50 = vpop.f32.mrf.mxu2 }
 0x1d2   : > { %v680_v51 = vsel %vm518_vm1, %v677_v50, -inf }
 0x1d3   : > { %681 = vmax.xlane.f32.xlu1 %v680_v51 }
 0x1d6   : > { %v1401_v52 = vpop.eup %1400 }
 0x1d7   : > { %v551_v53 = vsel %vm518_vm1, %v1401_v52, 0.0 }
 0x1d8   : > { %552 = vadd.xlane.f32.xlu0 %v551_v53 }
 0x1de   : > { %v726_v58 = vpop.permute.xlu0 %725 }
 0x1e8   : > { %v1908_v55 = vpop.f32.mrf.mxu1 }
 0x1e9   : > { %v964_v56 = vsel %vm518_vm1, %v1908_v55, -inf }
 0x1ea   : > { %965 = vmax.xlane.f32.xlu1 %v964_v56 }
 0x1ec   : > { %1009 = vrot.lane.b32.xlu0 %v484_v30, %s1670_s15 }
 0x216   : > { %823 = vmax.xlane.f32.xlu0 %v822_v57 }
 0x246   : > { %v682_v59 = vpop.xlane.xlu1 %681 }
 0x247   : > { %v683_v60 = vsub.f32 %v677_v50, %v682_v59 }
 0x249   : > { %v684_v61 = vmul.f32 1.442695, %v683_v60 }
 0x24b   : > { %1402 = vpow2.f32 %v684_v61  ;;  %v553_v62 = vpop.xlane.xlu0 %552 }
 0x24c   : > { %1404 = vrcp.f32 %v553_v62 }
 0x251   : > { %v1914_v63 = vpop.eup %1402 }
 0x252   : > { %v1405_v0 = vpop.eup %1404  ;;  %v686_v1 = vsel %vm518_vm1, %v1914_v63, 0.0 }
 0x253   : > { %687 = vadd.xlane.f32.xlu1 %v686_v1  ;;  %v555_v2 = vmul.f32 %v1405_v0, %v1401_v52 }
 0x255   : > { %1265 = vmatmul.msk.f32.vlgmr.msrb.gmra.mxu3 %vm518_vm1, %v555_v2 }
 0x256   : > { %1272 = vmatpush.xpose.msk.msrb.mxu3 %vm518_vm1, %v726_v58 }
 0x25d   : > { %1267 = vmatmul.msk.f32.vlgmr.msra.gmra.mxu3 %vm518_vm1, %v581_v34  ;;  %v966_v32 = vpop.xlane.xlu1 %965 }
 0x25e   : > { %1278 = vmatpush.xpose.msk.msra.mxu3 %vm518_vm1, %v868_v44  ;;  %v1010_v3 = vpop.permute.xlu0 %1009 }
 0x265   : > { %1273 = vmatmul.msk.f32.vlgmr.msrb.gmra.mxu3 %vm518_vm1, %v724_v41  ;;  %v967_v41 = vsub.f32 %v1908_v55, %v966_v32 }
 0x266   : > { %1284 = vmatpush.xpose.msk.msrb.mxu3 %vm518_vm1, %v1010_v3 }
 0x267   : > { %v968_v42 = vmul.f32 1.442695, %v967_v41 }
 0x26d   : > { %1279 = vmatmul.msk.f32.vlgmr.msra.gmra.mxu3 %vm518_vm1, %v866_v45 }
 0x275   : > { %1285 = vmatmul.msk.f32.vlgmr.msrb.gmra.mxu3 %vm518_vm1, %v1008_v4 }
 0x289   : > { %v824_v5 = vpop.xlane.xlu0 %823 }
 0x28a   : > { %v825_v6 = vsub.f32 %v819_v54, %v824_v5 }
 0x28c   : > { %v826_v7 = vmul.f32 1.442695, %v825_v6 }
 0x28e   : > { %1406 = vpow2.f32 %v826_v7 }
 0x294   : > { %v1926_v8 = vpop.eup %1406 }
 0x295   : > { %v828_v9 = vsel %vm518_vm1, %v1926_v8, 0.0 }
 0x296   : > { %829 = vadd.xlane.f32.xlu1 %v828_v9 }
 0x2af   : > { %762 = vrot.lane.b32.xlu1 %v1894_v33, %s1666_s22  ;;  %s1289_s22 = sshll.u32 %s1753_s16, 3  ;;  %s1121_s16 = scalar_lea.sflag [#allocation6], %s1847_s29 }
 0x2c6   : > { %v688_v36 = vpop.xlane.xlu1 %687 }
 0x2d8   : > { %v576_v10 = vpop.f32.mrf.mxu3 }
 0x2d9   : > { %579 = vst.msk [vmem:[#allocation3] sm:$0xff] %vm518_vm1, %v576_v10 }
 0x2e0   : > { %v605_v11 = vpop.f32.mrf.mxu3 }
 0x2e1   : > { %v608_v12 = vsel %vm518_vm1, %v605_v11, -inf }
 0x2e2   : > { %609 = vmax.xlane.f32.xlu0 %v608_v12 }
 0x2e8   : > { %v748_v13 = vpop.f32.mrf.mxu3 }
 0x2e9   : > { %v751_v14 = vsel %vm518_vm1, %v748_v13, -inf }
 0x2ea   : > { %752 = vmax.xlane.f32.xlu2 %v751_v14 }
 0x2f0   : > { %v890_v15 = vpop.f32.mrf.mxu3 }
 0x2f1   : > { %v893_v16 = vsel %vm518_vm1, %v890_v15, -inf }
 0x2f2   : > { %894 = vmax.xlane.f32.xlu2 %v893_v16 }
 0x2f8   : > { %v1032_v17 = vpop.f32.mrf.mxu3 }
 0x2f9   : > { %v1035_v18 = vsel %vm518_vm1, %v1032_v17, -inf }
 0x2fa   : > { %1036 = vmax.xlane.f32.xlu0 %v1035_v18  ;;  %v1087_v18 = vld [vmem:[#allocation12 + $0x38] sm:$0xff] }
 0x2fb   : > { %1099 = vmatpush.msrb.mxu1 %v1087_v18 }
 0x309   : > { %v830_v50 = vpop.xlane.xlu1 %829 }
 0x30e   : > { %691 = vrot.lane.b32.xlu0 %v1894_v33, %s1665_s28  ;;  %s1677_s28 = smov 48  }
 0x321   : > { %v763_v55 = vpop.permute.xlu1 %762 }
 0x355   : > { %v610_v19 = vpop.xlane.xlu0 %609 }
 0x356   : > { %v611_v20 = vsub.f32 %v605_v11, %v610_v19  ;;  %v1086_v19 = vld [vmem:[#allocation12 + $0x30] sm:$0xff] }
 0x357   : > { %1100 = vmatpush.msrb.mxu1 %v1086_v19 }
 0x358   : > { %v612_v21 = vmul.f32 1.442695, %v611_v20  ;;  %v1085_v20 = vld [vmem:[#allocation12 + $0x28] sm:$0xff] }
 0x359   : > { %1101 = vmatpush.msrb.mxu1 %v1085_v20 }
 0x35a   : > { %1408 = vpow2.f32 %v612_v21  ;;  %v1084_v21 = vld [vmem:[#allocation12 + $0x20] sm:$0xff] }
 0x35b   : > { %1102 = vmatpush.msrb.mxu1 %v1084_v21 }
 0x35d   : > { %v753_v22 = vpop.xlane.xlu2 %752 }
 0x35e   : > { %v754_v23 = vsub.f32 %v748_v13, %v753_v22 }
 0x360   : > { %v1409_v24 = vpop.eup %1408  ;;  %v755_v25 = vmul.f32 1.442695, %v754_v23 }
 0x361   : > { %v614_v26 = vsel %vm518_vm1, %v1409_v24, 0.0 }
 0x362   : > { %1410 = vpow2.f32 %v755_v25  ;;  %615 = vadd.xlane.f32.xlu2 %v614_v26  ;;  %v1082_v25 = vld [vmem:[#allocation12 + $0x10] sm:$0xff]  ;;  %v1081_v26 = vld [vmem:[#allocation12 + $0x8] sm:$0xff] }
 0x365   : > { %v895_v27 = vpop.xlane.xlu2 %894 }
 0x366   : > { %v896_v28 = vsub.f32 %v890_v15, %v895_v27  ;;  %v1080_v27 = vld [vmem:[#allocation12] sm:$0xff] }
 0x368   : > { %v1411_v29 = vpop.eup %1410  ;;  %v897_v30 = vmul.f32 1.442695, %v896_v28 }
 0x369   : > { %v757_v31 = vsel %vm518_vm1, %v1411_v29, 0.0 }
 0x36a   : > { %1412 = vpow2.f32 %v897_v30  ;;  %758 = vadd.xlane.f32.xlu0 %v757_v31 }
 0x36b   : > { %1414 = vrcp.f32 %v688_v36  ;;  %v1399_v36 = vld [vmem:[%s2014_s8] ss:$0 sm:$0xff] }
 0x36c   : > { %1416 = vpow2.f32 %v968_v42 }
 0x36d   : > { %v1037_v37 = vpop.xlane.xlu0 %1036 }
 0x36e   : > { %v1038_v43 = vsub.f32 %v1032_v17, %v1037_v37 }
 0x370   : > { %v1413_v34 = vpop.eup %1412  ;;  %v1039_v44 = vmul.f32 1.442695, %v1038_v43 }
 0x371   : > { %v899_v35 = vsel %vm518_vm1, %v1413_v34, 0.0  ;;  %v1415_v38 = vpop.eup %1414 }
 0x372   : > { %900 = vadd.xlane.f32.xlu1 %v899_v35  ;;  %v690_v39 = vmul.f32 %v1415_v38, %v1914_v63  ;;  %1418 = vpow2.f32 %v1039_v44  ;;  %v1417_v45 = vpop.eup %1416 }
 0x373   : > { %v970_v46 = vsel %vm518_vm1, %v1417_v45, 0.0 }
 0x378   : > { %v1419_v47 = vpop.eup %1418 }
 0x379   : > { %v1041_v48 = vsel %vm518_vm1, %v1419_v47, 0.0 }
 0x37a   : > { %620 = vrot.lane.b32.xlu2 %v1894_v33, %s1664_s23  ;;  %s1676_s23 = smov 56  }
 0x37e   : > { %833 = vrot.lane.b32.xlu0 %v1894_v33, %s1667_s20 }
 0x380   : > { %v692_v40 = vpop.permute.xlu0 %691 }
 0x381   : > { %712 = vmatpush.msra.mxu2 %v692_v40 }
 0x382   : > { %1271 = vmatmul.msk.f32.vlgmr.msra.gmra.mxu2 %vm518_vm1, %v690_v39 }
 0x38b   : > { %904 = vrot.lane.b32.xlu1 %v1894_v33, %s1668_s21 }
 0x393   : > { %975 = vrot.lane.b32.xlu1 %v1894_v33, %s1669_s24  ;;  %s1131_s24 = scalar_lea.hbm %s2015_s9, %s1289_s22 }
 0x39b   : > { %1046 = vrot.lane.b32.xlu1 %v1894_v33, %s1670_s15 }
 0x3a3   : > { %971 = vadd.xlane.f32.xlu2 %v970_v46 }
 0x3a8   : > { %1042 = vadd.xlane.f32.xlu0 %v1041_v48 }
 0x3d5   : > { %v616_v49 = vpop.xlane.xlu2 %615 }
 0x3d6   : > { %1420 = vrcp.f32 %v616_v49 }
 0x3dc   : > { %v1421_v51 = vpop.eup %1420 }
 0x3dd   : > { %v621_v52 = vpop.permute.xlu2 %620  ;;  %v759_v53 = vpop.xlane.xlu0 %758  ;;  %v618_v54 = vmul.f32 %v1421_v51, %v1409_v24  ;;  %v1083_v24 = vld [vmem:[#allocation12 + $0x18] sm:$0xff] }
 0x3de   : > { %1422 = vrcp.f32 %v759_v53  ;;  %641 = vmatpush.msrb.mxu0 %v621_v52  ;;  %1103 = vmatpush.msrb.mxu1 %v1083_v24 }
 0x3df   : > { %1268 = vmatmul.msk.f32.vlgmr.msrb.gmra.mxu0 %vm518_vm1, %v618_v54  ;;  %1424 = vrcp.f32 %v830_v50 }
 0x3e0   : > { %783 = vmatpush.msra.mxu0 %v763_v55  ;;  %1104 = vmatpush.msrb.mxu1 %v1082_v25 }
 0x3e2   : > { %1105 = vmatpush.msrb.mxu1 %v1081_v26 }
 0x3e4   : > { %v1423_v33 = vpop.eup %1422  ;;  %1106 = vmatpush.msrb.mxu1 %v1080_v27 }
 0x3e5   : > { %v761_v56 = vmul.f32 %v1423_v33, %v1411_v29  ;;  %v1425_v57 = vpop.eup %1424  ;;  %v901_v60 = vpop.xlane.xlu1 %900  ;;  %v1678_v29 = vmov 0.0  }
 0x3e6   : > { %v832_v58 = vmul.f32 %v1425_v57, %v1926_v8  ;;  %1426 = vrcp.f32 %v901_v60  ;;  %418 = vst.msk [vmem:[#allocation2] sm:$0xff] %vm417_vm0, %v1678_v29 }
 0x3e7   : > { %1274 = vmatmul.msk.f32.vlgmr.msra.gmra.mxu0 %vm518_vm1, %v761_v56 }
 0x3ec   : > { %v1427_v61 = vpop.eup %1426 }
 0x3ed   : > { %v903_v62 = vmul.f32 %v1427_v61, %v1413_v34  ;;  %v1078_v32 = vld [vmem:[#allocation2] sm:$0xff] }
 0x3f0   : > { %v834_v59 = vpop.permute.xlu0 %833 }
 0x3f1   : > { %854 = vmatpush.msrb.mxu2 %v834_v59 }
 0x3f2   : > { %1277 = vmatmul.msk.f32.vlgmr.msrb.gmra.mxu2 %vm518_vm1, %v832_v58 }
 0x3fd   : > { %v905_v63 = vpop.permute.xlu1 %904 }
 0x3fe   : > { %925 = vmatpush.msrb.mxu0 %v905_v63 }
 0x3ff   : > { %1280 = vmatmul.msk.f32.vlgmr.msrb.gmra.mxu0 %vm518_vm1, %v903_v62 }
 0x405   : > { %v976_v0 = vpop.permute.xlu1 %975  ;;  %v714_v1 = vpop.f32.mrf.mxu2 }
 0x406   : > { %718 = vrot.lane.b32.xlu1 %v714_v1, %s1671_s3  ;;  %996 = vmatpush.msra.mxu2 %v976_v0  ;;  %s1133_s3 = sshll.u32 %s415_s27, 4  ;;  %s1134_s3 = int_to_ptr.vmem [resolvable:$true] %s1133_s3 }
 0x40d   : > { %v1047_v2 = vpop.permute.xlu1 %1046 }
 0x40e   : > { %1067 = vmatpush.msra.mxu0 %v1047_v2 }
 0x416   : > { %v972_v3 = vpop.xlane.xlu2 %971 }
 0x417   : > { %1428 = vrcp.f32 %v972_v3 }
 0x41b   : > { %v1043_v4 = vpop.xlane.xlu0 %1042 }
 0x41c   : > { %1430 = vrcp.f32 %v1043_v4 }
 0x41d   : > { %v1429_v5 = vpop.eup %1428 }
 0x41e   : > { %v974_v6 = vmul.f32 %v1429_v5, %v1417_v45 }
 0x420   : > { %1283 = vmatmul.msk.f32.vlgmr.msra.gmra.mxu2 %vm518_vm1, %v974_v6 }
 0x422   : > { %v1431_v7 = vpop.eup %1430 }
 0x423   : > { %v1045_v8 = vmul.f32 %v1431_v7, %v1419_v47 }
 0x425   : > { %1286 = vmatmul.msk.f32.vlgmr.msra.gmra.mxu0 %vm518_vm1, %v1045_v8 }
 0x45c   : > { %v643_v9 = vpop.f32.mrf.mxu0 }
 0x45d   : > { %647 = vrot.lane.b32.xlu2 %v643_v9, %s1672_s1  ;;  %s1135_s1 = sshll.u32 %s1131_s24, 4  ;;  %s1136_s1 = int_to_ptr.hbm [resolvable:$true] %s1135_s1 }
 0x464   : > { %v785_v10 = vpop.f32.mrf.mxu0 }
 0x465   : > { %789 = vrot.lane.b32.xlu1 %v785_v10, %s1673_s2  ;;  %s1596_s2 = sshra.s32 %s1136_s1, 4  ;;  %s1597_s2 = int_to_ptr.hbm [resolvable:$true] %s1596_s2 }
 0x466   : > { %p1603_p12 = scmp.lt.s32.totalorder %s1597_s2, %s2015_s9 }
 0x475   : > { %v856_v11 = vpop.f32.mrf.mxu2 }
 0x476   : > { %860 = vrot.lane.b32.xlu0 %v856_v11, %s1674_s7  ;;  %s1598_s7 = scalar_lea.hbm %s1597_s2, 8 }
 0x477   : > { %p1599_p1 = scmp.ne.s32.totalorder %s1597_s2, %s1598_s7  ;;  %p1604_p7 = scmp.lt.s32.totalorder %s1602_s19, %s1598_s7 }
 0x478   : > { %v719_v16 = vpop.permute.xlu1 %718 }
 0x479   : > { %p1600_p3 = pnand %p1599_p1, %p1816_p4  ;;  %p1605_p8 = por %p1604_p7, %p1603_p12 }
 0x47b   : > { %p1601_p5 = pneg %p1600_p3 }
 0x47c   : > { %v927_v12 = vpop.f32.mrf.mxu0 }
 0x47d   : > { %931 = vrot.lane.b32.xlu1 %v927_v12, %s1675_s17  ;;  %p1606_p9 = pnand %p1605_p8, %p1601_p5 }
 0x4a2   : > { %v1069_v13 = vpop.f32.mrf.mxu0 }
 0x4a3   : > { %v998_v14 = vpop.f32.mrf.mxu2  ;;  %1073 = vrot.lane.b32.xlu1 %v1069_v13, %s1676_s23 }
 0x4a4   : > { %1002 = vrot.lane.b32.xlu2 %v998_v14, %s1677_s28 }
 0x4b7   : > { %v648_v15 = vpop.permute.xlu2 %647 }
 0x4b8   : > { %651 = vst.msk [vmem:[#allocation3] sm:$0xff] %vm650_vm2, %v648_v15 }
 0x4b9   : > { %722 = vst.msk [vmem:[#allocation3] sm:$0xff] %vm721_vm3, %v719_v16 }
 0x4d7   : > { %v790_v17 = vpop.permute.xlu1 %789 }
 0x4d8   : > { %793 = vst.msk [vmem:[#allocation3] sm:$0xff] %vm792_vm4, %v790_v17 }
 0x4e8   : > { %v861_v22 = vpop.permute.xlu0 %860 }
 0x4e9   : > { %864 = vst.msk [vmem:[#allocation3] sm:$0xff] %vm863_vm5, %v861_v22 }
 0x4ef   : > { %v932_v23 = vpop.permute.xlu1 %931 }
 0x4f0   : > { %935 = vst.msk [vmem:[#allocation3] sm:$0xff] %vm934_vm6, %v932_v23 }
 0x4fe   : > { %v1003_v28 = vpop.permute.xlu2 %1002 }
 0x4ff   : > { %1006 = vst.msk [vmem:[#allocation3] sm:$0xff] %vm1005_vm7, %v1003_v28 }
 0x515   : > { %v1074_v30 = vpop.permute.xlu1 %1073 }
 0x516   : > { %1077 = vst.msk [vmem:[#allocation3] sm:$0xff] %vm1076_vm8, %v1074_v30 }
 0x51d   : > { %v1079_v31 = vld [vmem:[#allocation3] sm:$0xff] }
 0x51e   : > { %1287 = vmatmul.msk.f32.vlgmr.msrb.gmra.mxu1 %vm417_vm0, %v1079_v31 }
 0x59b   : > { %v1108_v34 = vpop.f32.mrf.mxu1 }
 0x59c   : > { %v1111_v35 = vadd.f32 %v1108_v34, %v1078_v32 }
 0x59e   : > { %1112 = vst.msk [vmem:[#allocation2] sm:$0xff] %vm417_vm0, %v1111_v35 }
 0x5a5   : > { %v1113_v37 = vld [vmem:[#allocation2] sm:$0xff] }
 0x5a6   : > { %v1118_v38 = vadd.f32 %v1399_v36, %v1113_v37 }
 0x5a8   : > { %1119 = vst.msk [vmem:[%s415_s27] sm:$0xff] %vm417_vm0, %v1118_v38 }
 0x5a9   : > { %1609 = shalt.err (!%p1606_p9)
}
 0x5aa   : > { %1310 = dma.vmem_to_hbm [thread:$0]  (%p1816_p4), %s1134_s3, 128, %s1136_s1, %s1121_s16  }
 0x5ab PF: > { %s1147_s29 = sand.u32 1, %s1644_s30   ;;  %p2031_p10 = scmp.ge.s32.totalorder %s1656_s12, 2 }
 0x5ac   : > { %s1148_s20 = scalar_lea.sflag [#allocation6], %s1147_s29 }
 0x5ad   : > { %p1330_p13 = pnand %p2031_p10, %p1820_p6 }
 0x5af   : > { %p1331_p11 = pneg %p1330_p13 }
 0x5b1   : > { %1639 = dma.done.wait (%p1331_p11), %s1148_s20, 128  }
 0x5b2   : > { %1641 = vsyncadd (%p1331_p11), %s1148_s20, 4294967168  ;;  %p24_p0 = scmp.ge.s32.totalorder %s1790_s25, 4   ;;  %s2032_s30 = smov %s1648_s10 }
 0x5b3   : > { %s2033_s10 = smov %s1652_s11  ;;  %s2034_s11 = smov %s1801_s26 }
 0x5b4   : > { %s2035_s12 = smov %s1790_s25  ;;  %26 = sbr.rel (!%p24_p0) target bundleno = 12 (0xc), region = 117 }
 0x5b9   :  { %1154 = vsyncpa [#allocation5], 1 }
 0x5ba   :  { %1156 = vsyncpa [#allocation5 + $0x1], 1 }
 0x5bb   :  { %1157 = vsyncpa [#allocation8], 1 }
 0x5bc   :  { %1158 = vsyncpa [#allocation11], 1 }
 0x5bd   :  { %1159 = vsyncpa [#allocation6], 1 }
 0x5be   :  { %1161 = vsyncpa [#allocation6 + $0x1], 1 }

// kernel: tpu_custom_call.1
= control target key start
LH: loop header
LB: loop body
LE: loop exit
PB: predicated region body
PF: predicated region fallthrough
CT: control target
= control target key end

     0   :  { %s2006_s0 = inlined_call_operand.hbm [shape: f32[2,8,64], index: 0, kind: input, shape index: {}]   ;;  %s2007_s1 = inlined_call_operand.hbm [shape: f32[1,64,64], index: 1, kind: input, shape index: {}]   ;;  %s2008_s2 = inlined_call_operand.hbm [shape: f32[1,64,64], index: 2, kind: input, shape index: {}]   ;;  %s2009_s3 = inlined_call_operand.hbm [shape: f32[1,64,64], index: 3, kind: input, shape index: {}]   ;;  %s2010_s4 = inlined_call_operand.vmem [shape: f32[1,1,64], index: 4, kind: input, shape index: {}]   ;;  %s2011_s5 = inlined_call_operand.vmem [shape: f32[1,1,64], index: 5, kind: input, shape index: {}]   ;;  %s2012_s6 = inlined_call_operand.vmem [shape: f32[1,1,64], index: 6, kind: input, shape index: {}]   ;;  %s2013_s7 = inlined_call_operand.hbm [shape: f32[1,64,64], index: 7, kind: input, shape index: {}]   ;;  %s2014_s8 = inlined_call_operand.vmem [shape: f32[1,64], index: 8, kind: input, shape index: {}]   ;;  %s2015_s9 = inlined_call_operand.hbm [shape: f32[2,8,64], index: 9, kind: output, shape index: {}]  }
   0x1   :  { %2016 = sst [smem:[#allocation18_spill]] %s2007_s1 }
   0x2   :  { %2017 = sst [smem:[#allocation19_spill]] %s2008_s2 }
   0x3   :  { %2018 = sst [smem:[#allocation20_spill]] %s2009_s3 }
   0x4   :  { %2019 = sst [smem:[#allocation21_spill]] %s2013_s7 }
   0x5   :  { %14 = vsyncpa [#allocation5], 0 }
   0x6   :  { %16 = vsyncpa [#allocation5 + $0x1], 0 }
   0x7   :  { %17 = vsyncpa [#allocation8], 0 }
   0x8   :  { %18 = vsyncpa [#allocation11], 0 }
   0x9   :  { %19 = vsyncpa [#allocation6], 0 }
   0xa   :  { %21 = vsyncpa [#allocation6 + $0x1], 0  ;;  %s1729_s30 = smov 0   ;;  %s1731_s10 = smov 0  }
   0xb   :  { %s1733_s11 = smov 0   ;;  %s1735_s12 = smov 0  }
   0xc LB: > { %s2020_s1 = sld [smem:[#allocation18_spill]]  ;;  %s1753_s16 = sadd.s32 4294967295, %s1656_s12   ;;  %s1656_s12 = sphi %s1735_s12, %s2035_s12   ;;  %s1652_s11 = sphi %s1733_s11, %s2034_s11   ;;  %s1648_s10 = sphi %s1731_s10, %s2033_s10   ;;  %s1644_s30 = sphi %s1729_s30, %s2032_s30  }
   0xd   : > { %p1245_p0 = scmp.ge.s32.totalorder %s1656_s12, 1  ;;  %p48_p1 = scmp.eq.s32.totalorder %s1753_s16, 0 }
   0xe   : > { %p252_p2 = scmp.lt.s32.totalorder %s1656_s12, 3  ;;  %s1658_s18 = smov [#allocation7]  }
   0xf   : > { %s265_s19 = sshll.u32 %s1658_s18, 4  ;;  %s2022_s3 = sld [smem:[#allocation20_spill]]  ;;  %s266_s19 = int_to_ptr.vmem [resolvable:$true] %s265_s19 }
  0x10   : > { %p1758_p3 = pnand %p1245_p0, %p252_p2  ;;  %s2024_s2 = sld [smem:[#allocation19_spill]] }
  0x11   : > { %s1659_s27 = smov [#allocation10]   ;;  %s1660_s29 = smov 128  }
  0x12   : > { %s263_s15 = sshll.u32 %s2020_s1, 4  ;;  %p1312_p4 = pneg %p1758_p3  ;;  %s264_s15 = int_to_ptr.hbm [resolvable:$true] %s263_s15 }
  0x13   : > { %s293_s28 = sshll.u32 %s1659_s27, 4  ;;  %s1661_s13 = smov 8   ;;  %s294_s28 = int_to_ptr.vmem [resolvable:$true] %s293_s28 }
  0x14   : > { %p1770_p6 = pnand %p1312_p4, %p48_p1  ;;  %s2025_s7 = sld [smem:[#allocation21_spill]] }
  0x15   : > { %s291_s22 = sshll.u32 %s2022_s3, 4  ;;  %s1662_s21 = smov [#allocation9]   ;;  %s292_s22 = int_to_ptr.hbm [resolvable:$true] %s291_s22 }
  0x16   : > { %s277_s26 = sshll.u32 %s2024_s2, 4  ;;  %s279_s24 = sshll.u32 %s1662_s21, 4  ;;  %s278_s26 = int_to_ptr.hbm [resolvable:$true] %s277_s26  ;;  %s280_s24 = int_to_ptr.vmem [resolvable:$true] %s279_s24 }
  0x17   : > { %1315 = dma.hbm_to_vmem [thread:$0]  (!%p1770_p6), %s264_s15, 1024, %s266_s19, [#allocation8], %s1660_s29, %s1660_s29, %s1661_s13  }
  0x18   : > { %1321 = dma.hbm_to_vmem [thread:$0]  (!%p1770_p6), %s292_s22, 1024, %s294_s28, [#allocation11], %s1660_s29, %s1660_s29, %s1661_s13  }
  0x19   : > { %1318 = dma.hbm_to_vmem [thread:$0]  (!%p1770_p6), %s278_s26, 1024, %s280_s24, [#allocation8], %s1660_s29, %s1660_s29, %s1661_s13  }
  0x1a   : > { %s314_s20 = sshll.u32 %s2025_s7, 4  ;;  %s1663_s15 = smov [#allocation12]   ;;  %s315_s20 = int_to_ptr.hbm [resolvable:$true] %s314_s20 }
  0x1b   : > { %s316_s19 = sshll.u32 %s1663_s15, 4  ;;  %s1244_s22 = sadd.s32 4294967294, %s1656_s12   ;;  %s317_s19 = int_to_ptr.vmem [resolvable:$true] %s316_s19 }
  0x1c   : > { %1324 = dma.hbm_to_vmem [thread:$0]  (!%p1770_p6), %s315_s20, 1024, %s317_s19, [#allocation11], %s1660_s29, %s1660_s29, %s1661_s13  }
  0x1d   : > { %s1790_s25 = sadd.s32 1, %s1656_s12   ;;  %s34_s28 = sadd.s32 1, %s1652_s11 }
  0x1e   : > { %s31_s27 = ssub.s32 %s1656_s12, %s1790_s25  ;;  %p41_p8 = scmp.ne.s32.totalorder %s1652_s11, %s1648_s10 }
  0x1f   : > { %p32_p7 = scmp.eq.s32.totalorder %s31_s27, 0  ;;  %p42_p9 = scmp.eq.s32.totalorder %s1656_s12, 0 }
  0x20   : > { %p47_p10 = scmp.ne.s32.totalorder %s1648_s10, %s1644_s30  ;;  %p239_p13 = scmp.eq.s32.totalorder %s1753_s16, 1 }
  0x21   : > { %s1801_s26 = scalar_select %p32_p7, %s1652_s11, %s34_s28  }
  0x22   : > { %p1803_p11 = por %p42_p9, %p41_p8  ;;  %p1809_p12 = por %p48_p1, %p47_p10 }
  0x23   : > { %p245_p0 = scmp.eq.s32.totalorder %s1244_s22, 1  ;;  %p1337_p2 = scmp.lt.s32.totalorder %s1656_s12, 2 }
  0x24   : > { %s333_s29 = sand.u32 1, %s1652_s11   ;;  %p1816_p4 = por %p239_p13, %p41_p8 }
  0x25   : > { %p1820_p6 = por %p245_p0, %p47_p10  ;;  %s1251_s20 = sshll.u32 %s333_s29, 3 }
  0x26   : > { %s1252_s21 = sshll.u32 %s1656_s12, 3  ;;  %s337_s27 = scalar_lea.vmem [#allocation4], %s1251_s20 }
  0x27   : > { %s341_s19 = scalar_lea.hbm %s2006_s0, %s1252_s21  ;;  %s345_s28 = sshll.u32 %s337_s27, 4  ;;  %s346_s28 = int_to_ptr.vmem [resolvable:$true] %s345_s28 }
  0x28   : > { %s343_s1 = sshll.u32 %s341_s19, 4  ;;  %p1830_p7 = pnand %p1337_p2, %p1803_p11  ;;  %s344_s1 = int_to_ptr.hbm [resolvable:$true] %s343_s1 }
  0x29   : > { %s334_s2 = scalar_lea.sflag [#allocation5], %s333_s29  ;;  %s1552_s3 = sshra.s32 %s344_s1, 4  ;;  %s1553_s3 = int_to_ptr.hbm [resolvable:$true] %s1552_s3 }
  0x2a   : > { %s1554_s7 = scalar_lea.hbm %s1553_s3, 8  ;;  %p1556_p9 = pneg %p1830_p7 }
  0x2b   : > { %p1555_p8 = scmp.ne.s32.totalorder %s1553_s3, %s1554_s7  ;;  %s1559_s24 = scalar_lea.hbm %s2006_s0, 16 }
  0x2c   : > { %p1560_p11 = scmp.lt.s32.totalorder %s1553_s3, %s2006_s0  ;;  %p1561_p0 = scmp.lt.s32.totalorder %s1559_s24, %s1554_s7 }
  0x2d   : > { %p1557_p10 = pnand %p1556_p9, %p1555_p8 }
  0x2e   : > { %p1562_p2 = por %p1561_p0, %p1560_p11 }
  0x2f   : > { %p1558_p13 = pneg %p1557_p10 }
  0x31   : > { %p1563_p5 = pnand %p1562_p2, %p1558_p13 }
  0x33   : > { %1566 = shalt.err (!%p1563_p5)
}
  0x34   : > { %1328 = dma.hbm_to_vmem [thread:$0]  (!%p1830_p7), %s344_s1, 128, %s346_s28, %s334_s2  }
  0x35   : > { %354 = sbr.rel (%p1758_p3) target bundleno = 1451 (0x5ab), region = 56  ;;  %s1847_s29 = sand.u32 (!%p1758_p3), 1, %s1648_s10  }
  0x36   : > { %s1254_s19 = sshll.u32 (!%p1758_p3), %s1847_s29, 3  ;;  %s357_s27 = scalar_lea.sflag (!%p1758_p3), [#allocation5], %s1847_s29 }
  0x37   : > { %s1853_s3 = scalar_lea.vmem (!%p1758_p3), [#allocation4], %s1254_s19 }
  0x3a   : > { %1627 = dma.done.wait (%p1809_p12), %s357_s27, 128  }
  0x3b   : > { %1629 = vsyncadd (%p1809_p12), %s357_s27, 4294967168 }
  0x3c   : > { %1631 = dma.done.wait (%p48_p1), [#allocation8], 2048  }
  0x3d   : > { %1633 = vsyncadd (%p48_p1), [#allocation8], 4294965248 }
  0x3e   : > { %1635 = dma.done.wait (%p48_p1), [#allocation11], 2048  }
  0x3f   : > { %1637 = vsyncadd (%p48_p1), [#allocation11], 4294965248  ;;  %v426_v0 = vld [vmem:[#allocation7 + $0x38] sm:$0xff]  ;;  %v425_v2 = vld [vmem:[#allocation7 + $0x30] sm:$0xff]  ;;  %vm417_vm0 = vcmask 523264   ;;  %vm518_vm1 = vcmask 64512  }
  0x40   : > { %v461_v1 = vld [vmem:[#allocation9 + $0x38] sm:$0xff]  ;;  %442 = vmatpush.msra.mxu0 %v426_v0  ;;  %v460_v3 = vld [vmem:[#allocation9 + $0x30] sm:$0xff]  ;;  %v424_v4 = vld [vmem:[#allocation7 + $0x28] sm:$0xff]  ;;  %s1664_s23 = smov 120   ;;  %s1665_s28 = smov 112   ;;  %vm650_vm2 = vcmask 130112  }
  0x41   : > { %474 = vmatpush.msra.mxu1 %v461_v1  ;;  %v459_v5 = vld [vmem:[#allocation9 + $0x28] sm:$0xff]  ;;  %v423_v6 = vld [vmem:[#allocation7 + $0x20] sm:$0xff]  ;;  %v493_v8 = vld [vmem:[#allocation10 + $0x38] sm:$0xff]  ;;  %s1666_s22 = smov 104   ;;  %s1667_s20 = smov 96   ;;  %vm721_vm3 = vcmask 195712  }
  0x42   : > { %443 = vmatpush.msra.mxu0 %v425_v2  ;;  %v458_v7 = vld [vmem:[#allocation9 + $0x20] sm:$0xff]  ;;  %v422_v9 = vld [vmem:[#allocation7 + $0x18] sm:$0xff]  ;;  %506 = vmatpush.msra.mxu2 %v493_v8  ;;  %v492_v11 = vld [vmem:[#allocation10 + $0x30] sm:$0xff]  ;;  %s1668_s21 = smov 88   ;;  %s1669_s24 = smov 80   ;;  %vm792_vm4 = vcmask 261312  }
  0x43   : > { %475 = vmatpush.msra.mxu1 %v460_v3  ;;  %v457_v10 = vld [vmem:[#allocation9 + $0x18] sm:$0xff]  ;;  %v421_v12 = vld [vmem:[#allocation7 + $0x10] sm:$0xff]  ;;  %v491_v13 = vld [vmem:[#allocation10 + $0x28] sm:$0xff]  ;;  %s1670_s15 = smov 72   ;;  %s1672_s1 = smov 8   ;;  %vm863_vm5 = vcmask 326912  }
  0x44   : > { %444 = vmatpush.msra.mxu0 %v424_v4  ;;  %v456_v14 = vld [vmem:[#allocation9 + $0x10] sm:$0xff]  ;;  %507 = vmatpush.msra.mxu2 %v492_v11  ;;  %v490_v15 = vld [vmem:[#allocation10 + $0x20] sm:$0xff]  ;;  %v420_v16 = vld [vmem:[#allocation7 + $0x8] sm:$0xff]  ;;  %s1673_s2 = smov 24   ;;  %s1674_s7 = smov 32   ;;  %vm934_vm6 = vcmask 392512  }
  0x45   : > { %476 = vmatpush.msra.mxu1 %v459_v5  ;;  %v455_v17 = vld [vmem:[#allocation9 + $0x8] sm:$0xff]  ;;  %v489_v18 = vld [vmem:[#allocation10 + $0x18] sm:$0xff]  ;;  %v419_v19 = vld [vmem:[#allocation7] sm:$0xff]  ;;  %s1675_s17 = smov 40   ;;  %vm1005_vm7 = vcmask 458112   ;;  %vm1076_vm8 = vcmask 523712  }
  0x46   : > { %445 = vmatpush.msra.mxu0 %v423_v6  ;;  %508 = vmatpush.msra.mxu2 %v491_v13  ;;  %v454_v20 = vld [vmem:[#allocation9] sm:$0xff]  ;;  %v416_v21 = vld [vmem:[%s1853_s3] sm:$0xff]  ;;  %v487_v23 = vld [vmem:[#allocation10 + $0x8] sm:$0xff]  ;;  %s1671_s3 = smov 16   ;;  %s415_s27 = scalar_lea.vmem [#allocation13], %s1254_s19 }
  0x47   : > { %477 = vmatpush.msra.mxu1 %v458_v7  ;;  %v488_v22 = vld [vmem:[#allocation10 + $0x10] sm:$0xff]  ;;  %v486_v24 = vld [vmem:[#allocation10] sm:$0xff]  ;;  %s1602_s19 = scalar_lea.hbm %s2015_s9, 16 }
  0x48   : > { %446 = vmatpush.msra.mxu0 %v422_v9  ;;  %509 = vmatpush.msra.mxu2 %v490_v15  ;;  %v1396_v25 = vld [vmem:[%s2010_s4] ss:$0 sm:$0xff] }
  0x49   : > { %478 = vmatpush.msra.mxu1 %v457_v10  ;;  %v1397_v26 = vld [vmem:[%s2011_s5] ss:$0 sm:$0xff] }
  0x4a   : > { %447 = vmatpush.msra.mxu0 %v421_v12  ;;  %510 = vmatpush.msra.mxu2 %v489_v18  ;;  %v1398_v31 = vld [vmem:[%s2012_s6] ss:$0 sm:$0xff] }
  0x4b   : > { %479 = vmatpush.msra.mxu1 %v456_v14 }
  0x4c   : > { %448 = vmatpush.msra.mxu0 %v420_v16  ;;  %511 = vmatpush.msra.mxu2 %v488_v22 }
  0x4d   : > { %480 = vmatpush.msra.mxu1 %v455_v17 }
  0x4e   : > { %449 = vmatpush.msra.mxu0 %v419_v19  ;;  %512 = vmatpush.msra.mxu2 %v487_v23 }
  0x4f   : > { %481 = vmatpush.msra.mxu1 %v454_v20  ;;  %1260 = vmatmul.msk.f32.vlgmr.msra.gmra.mxu0 %vm417_vm0, %v416_v21 }
  0x50   : > { %1261 = vmatmul.msk.f32.vlgmr.msra.gmra.mxu1 %vm417_vm0, %v416_v21  ;;  %513 = vmatpush.msra.mxu2 %v486_v24 }
  0x51   : > { %1262 = vmatmul.msk.f32.vlgmr.msra.gmra.mxu2 %vm417_vm0, %v416_v21 }
  0xcc   : > { %v451_v27 = vpop.f32.mrf.mxu0 }
  0xcd   : > { %v483_v28 = vpop.f32.mrf.mxu1  ;;  %v452_v29 = vadd.f32 %v1396_v25, %v451_v27 }
  0xce   : > { %v484_v30 = vadd.f32 %v1397_v26, %v483_v28 }
  0xcf   : > { %580 = vrot.lane.b32.xlu2 %v452_v29, %s1664_s23 }
  0xd0   : > { %582 = vrot.lane.b32.xlu1 %v484_v30, %s1664_s23  ;;  %1263 = vmatpush.xpose.msk.msra.mxu3 %vm518_vm1, %v484_v30 }
  0xd3   : > { %1264 = vmatmul.msk.f32.vlgmr.msra.gmra.mxu3 %vm518_vm1, %v452_v29 }
  0xd4   : > { %v515_v32 = vpop.f32.mrf.mxu2 }
  0xd5   : > { %v1894_v33 = vadd.f32 %v1398_v31, %v515_v32 }
  0xd7   : > { %652 = vrot.lane.b32.xlu2 %v452_v29, %s1665_s28  ;;  %574 = vmatpush.msrb.mxu3 %v1894_v33 }
  0xd8   : > { %654 = vrot.lane.b32.xlu1 %v484_v30, %s1665_s28 }
  0xdf   : > { %796 = vrot.lane.b32.xlu2 %v484_v30, %s1667_s20 }
  0xe0   : > { %723 = vrot.lane.b32.xlu1 %v452_v29, %s1666_s22 }
  0xe7   : > { %794 = vrot.lane.b32.xlu2 %v452_v29, %s1667_s20 }
  0xe8   : > { %867 = vrot.lane.b32.xlu1 %v484_v30, %s1668_s21 }
  0xef   : > { %938 = vrot.lane.b32.xlu2 %v484_v30, %s1669_s24 }
  0xf0   : > { %865 = vrot.lane.b32.xlu1 %v452_v29, %s1668_s21 }
  0xf7   : > { %1007 = vrot.lane.b32.xlu2 %v452_v29, %s1670_s15 }
  0xf8   : > { %936 = vrot.lane.b32.xlu1 %v452_v29, %s1669_s24 }
 0x129   : > { %v581_v34 = vpop.permute.xlu2 %580 }
 0x131   : > { %v653_v35 = vpop.permute.xlu2 %652 }
 0x139   : > { %v797_v36 = vpop.permute.xlu2 %796 }
 0x13a   : > { %1275 = vmatpush.xpose.msk.msrb.mxu1 %vm518_vm1, %v797_v36 }
 0x141   : > { %v795_v38 = vpop.permute.xlu2 %794 }
 0x142   : > { %v583_v37 = vpop.permute.xlu1 %582  ;;  %1276 = vmatmul.msk.f32.vlgmr.msrb.gmra.mxu1 %vm518_vm1, %v795_v38 }
 0x143   : > { %1266 = vmatpush.xpose.msk.msra.mxu3 %vm518_vm1, %v583_v37 }
 0x149   : > { %v939_v40 = vpop.permute.xlu2 %938 }
 0x14a   : > { %v655_v39 = vpop.permute.xlu1 %654  ;;  %1281 = vmatpush.xpose.msk.msra.mxu1 %vm518_vm1, %v939_v40 }
 0x14b   : > { %1269 = vmatpush.xpose.msk.msrb.mxu2 %vm518_vm1, %v655_v39 }
 0x14e   : > { %1270 = vmatmul.msk.f32.vlgmr.msrb.gmra.mxu2 %vm518_vm1, %v653_v35 }
 0x151   : > { %v1008_v4 = vpop.permute.xlu2 %1007 }
 0x152   : > { %v724_v41 = vpop.permute.xlu1 %723 }
 0x156   : > { %v542_v42 = vpop.f32.mrf.mxu3 }
 0x157   : > { %v545_v43 = vsel %vm518_vm1, %v542_v42, -inf }
 0x158   : > { %546 = vmax.xlane.f32.xlu0 %v545_v43 }
 0x15a   : > { %v868_v44 = vpop.permute.xlu1 %867 }
 0x162   : > { %v866_v45 = vpop.permute.xlu1 %865 }
 0x16a   : > { %v937_v46 = vpop.permute.xlu1 %936 }
 0x16b   : > { %1282 = vmatmul.msk.f32.vlgmr.msra.gmra.mxu1 %vm518_vm1, %v937_v46 }
 0x16c   : > { %725 = vrot.lane.b32.xlu0 %v484_v30, %s1666_s22 }
 0x1bf   : > { %v819_v54 = vpop.f32.mrf.mxu1 }
 0x1c0   : > { %v822_v57 = vsel %vm518_vm1, %v819_v54, -inf }
 0x1cb   : > { %v547_v47 = vpop.xlane.xlu0 %546 }
 0x1cc   : > { %v548_v48 = vsub.f32 %v542_v42, %v547_v47 }
 0x1ce   : > { %v549_v49 = vmul.f32 1.442695, %v548_v48 }
 0x1d0   : > { %1400 = vpow2.f32 %v549_v49 }
 0x1d1   : > { %v677_v50 = vpop.f32.mrf.mxu2 }
 0x1d2   : > { %v680_v51 = vsel %vm518_vm1, %v677_v50, -inf }
 0x1d3   : > { %681 = vmax.xlane.f32.xlu1 %v680_v51 }
 0x1d6   : > { %v1401_v52 = vpop.eup %1400 }
 0x1d7   : > { %v551_v53 = vsel %vm518_vm1, %v1401_v52, 0.0 }
 0x1d8   : > { %552 = vadd.xlane.f32.xlu0 %v551_v53 }
 0x1de   : > { %v726_v58 = vpop.permute.xlu0 %725 }
 0x1e8   : > { %v1908_v55 = vpop.f32.mrf.mxu1 }
 0x1e9   : > { %v964_v56 = vsel %vm518_vm1, %v1908_v55, -inf }
 0x1ea   : > { %965 = vmax.xlane.f32.xlu1 %v964_v56 }
 0x1ec   : > { %1009 = vrot.lane.b32.xlu0 %v484_v30, %s1670_s15 }
 0x216   : > { %823 = vmax.xlane.f32.xlu0 %v822_v57 }
 0x246   : > { %v682_v59 = vpop.xlane.xlu1 %681 }
 0x247   : > { %v683_v60 = vsub.f32 %v677_v50, %v682_v59 }
 0x249   : > { %v684_v61 = vmul.f32 1.442695, %v683_v60 }
 0x24b   : > { %1402 = vpow2.f32 %v684_v61  ;;  %v553_v62 = vpop.xlane.xlu0 %552 }
 0x24c   : > { %1404 = vrcp.f32 %v553_v62 }
 0x251   : > { %v1914_v63 = vpop.eup %1402 }
 0x252   : > { %v1405_v0 = vpop.eup %1404  ;;  %v686_v1 = vsel %vm518_vm1, %v1914_v63, 0.0 }
 0x253   : > { %687 = vadd.xlane.f32.xlu1 %v686_v1  ;;  %v555_v2 = vmul.f32 %v1405_v0, %v1401_v52 }
 0x255   : > { %1265 = vmatmul.msk.f32.vlgmr.msrb.gmra.mxu3 %vm518_vm1, %v555_v2 }
 0x256   : > { %1272 = vmatpush.xpose.msk.msrb.mxu3 %vm518_vm1, %v726_v58 }
 0x25d   : > { %1267 = vmatmul.msk.f32.vlgmr.msra.gmra.mxu3 %vm518_vm1, %v581_v34  ;;  %v966_v32 = vpop.xlane.xlu1 %965 }
 0x25e   : > { %1278 = vmatpush.xpose.msk.msra.mxu3 %vm518_vm1, %v868_v44  ;;  %v1010_v3 = vpop.permute.xlu0 %1009 }
 0x265   : > { %1273 = vmatmul.msk.f32.vlgmr.msrb.gmra.mxu3 %vm518_vm1, %v724_v41  ;;  %v967_v41 = vsub.f32 %v1908_v55, %v966_v32 }
 0x266   : > { %1284 = vmatpush.xpose.msk.msrb.mxu3 %vm518_vm1, %v1010_v3 }
 0x267   : > { %v968_v42 = vmul.f32 1.442695, %v967_v41 }
 0x26d   : > { %1279 = vmatmul.msk.f32.vlgmr.msra.gmra.mxu3 %vm518_vm1, %v866_v45 }
 0x275   : > { %1285 = vmatmul.msk.f32.vlgmr.msrb.gmra.mxu3 %vm518_vm1, %v1008_v4 }
 0x289   : > { %v824_v5 = vpop.xlane.xlu0 %823 }
 0x28a   : > { %v825_v6 = vsub.f32 %v819_v54, %v824_v5 }
 0x28c   : > { %v826_v7 = vmul.f32 1.442695, %v825_v6 }
 0x28e   : > { %1406 = vpow2.f32 %v826_v7 }
 0x294   : > { %v1926_v8 = vpop.eup %1406 }
 0x295   : > { %v828_v9 = vsel %vm518_vm1, %v1926_v8, 0.0 }
 0x296   : > { %829 = vadd.xlane.f32.xlu1 %v828_v9 }
 0x2af   : > { %762 = vrot.lane.b32.xlu1 %v1894_v33, %s1666_s22  ;;  %s1289_s22 = sshll.u32 %s1753_s16, 3  ;;  %s1121_s16 = scalar_lea.sflag [#allocation6], %s1847_s29 }
 0x2c6   : > { %v688_v36 = vpop.xlane.xlu1 %687 }
 0x2d8   : > { %v576_v10 = vpop.f32.mrf.mxu3 }
 0x2d9   : > { %579 = vst.msk [vmem:[#allocation3] sm:$0xff] %vm518_vm1, %v576_v10 }
 0x2e0   : > { %v605_v11 = vpop.f32.mrf.mxu3 }
 0x2e1   : > { %v608_v12 = vsel %vm518_vm1, %v605_v11, -inf }
 0x2e2   : > { %609 = vmax.xlane.f32.xlu0 %v608_v12 }
 0x2e8   : > { %v748_v13 = vpop.f32.mrf.mxu3 }
 0x2e9   : > { %v751_v14 = vsel %vm518_vm1, %v748_v13, -inf }
 0x2ea   : > { %752 = vmax.xlane.f32.xlu2 %v751_v14 }
 0x2f0   : > { %v890_v15 = vpop.f32.mrf.mxu3 }
 0x2f1   : > { %v893_v16 = vsel %vm518_vm1, %v890_v15, -inf }
 0x2f2   : > { %894 = vmax.xlane.f32.xlu2 %v893_v16 }
 0x2f8   : > { %v1032_v17 = vpop.f32.mrf.mxu3 }
 0x2f9   : > { %v1035_v18 = vsel %vm518_vm1, %v1032_v17, -inf }
 0x2fa   : > { %1036 = vmax.xlane.f32.xlu0 %v1035_v18  ;;  %v1087_v18 = vld [vmem:[#allocation12 + $0x38] sm:$0xff] }
 0x2fb   : > { %1099 = vmatpush.msrb.mxu1 %v1087_v18 }
 0x309   : > { %v830_v50 = vpop.xlane.xlu1 %829 }
 0x30e   : > { %691 = vrot.lane.b32.xlu0 %v1894_v33, %s1665_s28  ;;  %s1677_s28 = smov 48  }
 0x321   : > { %v763_v55 = vpop.permute.xlu1 %762 }
 0x355   : > { %v610_v19 = vpop.xlane.xlu0 %609 }
 0x356   : > { %v611_v20 = vsub.f32 %v605_v11, %v610_v19  ;;  %v1086_v19 = vld [vmem:[#allocation12 + $0x30] sm:$0xff] }
 0x357   : > { %1100 = vmatpush.msrb.mxu1 %v1086_v19 }
 0x358   : > { %v612_v21 = vmul.f32 1.442695, %v611_v20  ;;  %v1085_v20 = vld [vmem:[#allocation12 + $0x28] sm:$0xff] }
 0x359   : > { %1101 = vmatpush.msrb.mxu1 %v1085_v20 }
 0x35a   : > { %1408 = vpow2.f32 %v612_v21  ;;  %v1084_v21 = vld [vmem:[#allocation12 + $0x20] sm:$0xff] }
 0x35b   : > { %1102 = vmatpush.msrb.mxu1 %v1084_v21 }
 0x35d   : > { %v753_v22 = vpop.xlane.xlu2 %752 }
 0x35e   : > { %v754_v23 = vsub.f32 %v748_v13, %v753_v22 }
 0x360   : > { %v1409_v24 = vpop.eup %1408  ;;  %v755_v25 = vmul.f32 1.442695, %v754_v23 }
 0x361   : > { %v614_v26 = vsel %vm518_vm1, %v1409_v24, 0.0 }
 0x362   : > { %1410 = vpow2.f32 %v755_v25  ;;  %615 = vadd.xlane.f32.xlu2 %v614_v26  ;;  %v1082_v25 = vld [vmem:[#allocation12 + $0x10] sm:$0xff]  ;;  %v1081_v26 = vld [vmem:[#allocation12 + $0x8] sm:$0xff] }
 0x365   : > { %v895_v27 = vpop.xlane.xlu2 %894 }
 0x366   : > { %v896_v28 = vsub.f32 %v890_v15, %v895_v27  ;;  %v1080_v27 = vld [vmem:[#allocation12] sm:$0xff] }
 0x368   : > { %v1411_v29 = vpop.eup %1410  ;;  %v897_v30 = vmul.f32 1.442695, %v896_v28 }
 0x369   : > { %v757_v31 = vsel %vm518_vm1, %v1411_v29, 0.0 }
 0x36a   : > { %1412 = vpow2.f32 %v897_v30  ;;  %758 = vadd.xlane.f32.xlu0 %v757_v31 }
 0x36b   : > { %1414 = vrcp.f32 %v688_v36  ;;  %v1399_v36 = vld [vmem:[%s2014_s8] ss:$0 sm:$0xff] }
 0x36c   : > { %1416 = vpow2.f32 %v968_v42 }
 0x36d   : > { %v1037_v37 = vpop.xlane.xlu0 %1036 }
 0x36e   : > { %v1038_v43 = vsub.f32 %v1032_v17, %v1037_v37 }
 0x370   : > { %v1413_v34 = vpop.eup %1412  ;;  %v1039_v44 = vmul.f32 1.442695, %v1038_v43 }
 0x371   : > { %v899_v35 = vsel %vm518_vm1, %v1413_v34, 0.0  ;;  %v1415_v38 = vpop.eup %1414 }
 0x372   : > { %900 = vadd.xlane.f32.xlu1 %v899_v35  ;;  %v690_v39 = vmul.f32 %v1415_v38, %v1914_v63  ;;  %1418 = vpow2.f32 %v1039_v44  ;;  %v1417_v45 = vpop.eup %1416 }
 0x373   : > { %v970_v46 = vsel %vm518_vm1, %v1417_v45, 0.0 }
 0x378   : > { %v1419_v47 = vpop.eup %1418 }
 0x379   : > { %v1041_v48 = vsel %vm518_vm1, %v1419_v47, 0.0 }
 0x37a   : > { %620 = vrot.lane.b32.xlu2 %v1894_v33, %s1664_s23  ;;  %s1676_s23 = smov 56  }
 0x37e   : > { %833 = vrot.lane.b32.xlu0 %v1894_v33, %s1667_s20 }
 0x380   : > { %v692_v40 = vpop.permute.xlu0 %691 }
 0x381   : > { %712 = vmatpush.msra.mxu2 %v692_v40 }
 0x382   : > { %1271 = vmatmul.msk.f32.vlgmr.msra.gmra.mxu2 %vm518_vm1, %v690_v39 }
 0x38b   : > { %904 = vrot.lane.b32.xlu1 %v1894_v33, %s1668_s21 }
 0x393   : > { %975 = vrot.lane.b32.xlu1 %v1894_v33, %s1669_s24  ;;  %s1131_s24 = scalar_lea.hbm %s2015_s9, %s1289_s22 }
 0x39b   : > { %1046 = vrot.lane.b32.xlu1 %v1894_v33, %s1670_s15 }
 0x3a3   : > { %971 = vadd.xlane.f32.xlu2 %v970_v46 }
 0x3a8   : > { %1042 = vadd.xlane.f32.xlu0 %v1041_v48 }
 0x3d5   : > { %v616_v49 = vpop.xlane.xlu2 %615 }
 0x3d6   : > { %1420 = vrcp.f32 %v616_v49 }
 0x3dc   : > { %v1421_v51 = vpop.eup %1420 }
 0x3dd   : > { %v621_v52 = vpop.permute.xlu2 %620  ;;  %v759_v53 = vpop.xlane.xlu0 %758  ;;  %v618_v54 = vmul.f32 %v1421_v51, %v1409_v24  ;;  %v1083_v24 = vld [vmem:[#allocation12 + $0x18] sm:$0xff] }
 0x3de   : > { %1422 = vrcp.f32 %v759_v53  ;;  %641 = vmatpush.msrb.mxu0 %v621_v52  ;;  %1103 = vmatpush.msrb.mxu1 %v1083_v24 }
 0x3df   : > { %1268 = vmatmul.msk.f32.vlgmr.msrb.gmra.mxu0 %vm518_vm1, %v618_v54  ;;  %1424 = vrcp.f32 %v830_v50 }
 0x3e0   : > { %783 = vmatpush.msra.mxu0 %v763_v55  ;;  %1104 = vmatpush.msrb.mxu1 %v1082_v25 }
 0x3e2   : > { %1105 = vmatpush.msrb.mxu1 %v1081_v26 }
 0x3e4   : > { %v1423_v33 = vpop.eup %1422  ;;  %1106 = vmatpush.msrb.mxu1 %v1080_v27 }
 0x3e5   : > { %v761_v56 = vmul.f32 %v1423_v33, %v1411_v29  ;;  %v1425_v57 = vpop.eup %1424  ;;  %v901_v60 = vpop.xlane.xlu1 %900  ;;  %v1678_v29 = vmov 0.0  }
 0x3e6   : > { %v832_v58 = vmul.f32 %v1425_v57, %v1926_v8  ;;  %1426 = vrcp.f32 %v901_v60  ;;  %418 = vst.msk [vmem:[#allocation2] sm:$0xff] %vm417_vm0, %v1678_v29 }
 0x3e7   : > { %1274 = vmatmul.msk.f32.vlgmr.msra.gmra.mxu0 %vm518_vm1, %v761_v56 }
 0x3ec   : > { %v1427_v61 = vpop.eup %1426 }
 0x3ed   : > { %v903_v62 = vmul.f32 %v1427_v61, %v1413_v34  ;;  %v1078_v32 = vld [vmem:[#allocation2] sm:$0xff] }
 0x3f0   : > { %v834_v59 = vpop.permute.xlu0 %833 }
 0x3f1   : > { %854 = vmatpush.msrb.mxu2 %v834_v59 }
 0x3f2   : > { %1277 = vmatmul.msk.f32.vlgmr.msrb.gmra.mxu2 %vm518_vm1, %v832_v58 }
 0x3fd   : > { %v905_v63 = vpop.permute.xlu1 %904 }
 0x3fe   : > { %925 = vmatpush.msrb.mxu0 %v905_v63 }
 0x3ff   : > { %1280 = vmatmul.msk.f32.vlgmr.msrb.gmra.mxu0 %vm518_vm1, %v903_v62 }
 0x405   : > { %v976_v0 = vpop.permute.xlu1 %975  ;;  %v714_v1 = vpop.f32.mrf.mxu2 }
 0x406   : > { %718 = vrot.lane.b32.xlu1 %v714_v1, %s1671_s3  ;;  %996 = vmatpush.msra.mxu2 %v976_v0  ;;  %s1133_s3 = sshll.u32 %s415_s27, 4  ;;  %s1134_s3 = int_to_ptr.vmem [resolvable:$true] %s1133_s3 }
 0x40d   : > { %v1047_v2 = vpop.permute.xlu1 %1046 }
 0x40e   : > { %1067 = vmatpush.msra.mxu0 %v1047_v2 }
 0x416   : > { %v972_v3 = vpop.xlane.xlu2 %971 }
 0x417   : > { %1428 = vrcp.f32 %v972_v3 }
 0x41b   : > { %v1043_v4 = vpop.xlane.xlu0 %1042 }
 0x41c   : > { %1430 = vrcp.f32 %v1043_v4 }
 0x41d   : > { %v1429_v5 = vpop.eup %1428 }
 0x41e   : > { %v974_v6 = vmul.f32 %v1429_v5, %v1417_v45 }
 0x420   : > { %1283 = vmatmul.msk.f32.vlgmr.msra.gmra.mxu2 %vm518_vm1, %v974_v6 }
 0x422   : > { %v1431_v7 = vpop.eup %1430 }
 0x423   : > { %v1045_v8 = vmul.f32 %v1431_v7, %v1419_v47 }
 0x425   : > { %1286 = vmatmul.msk.f32.vlgmr.msra.gmra.mxu0 %vm518_vm1, %v1045_v8 }
 0x45c   : > { %v643_v9 = vpop.f32.mrf.mxu0 }
 0x45d   : > { %647 = vrot.lane.b32.xlu2 %v643_v9, %s1672_s1  ;;  %s1135_s1 = sshll.u32 %s1131_s24, 4  ;;  %s1136_s1 = int_to_ptr.hbm [resolvable:$true] %s1135_s1 }
 0x464   : > { %v785_v10 = vpop.f32.mrf.mxu0 }
 0x465   : > { %789 = vrot.lane.b32.xlu1 %v785_v10, %s1673_s2  ;;  %s1596_s2 = sshra.s32 %s1136_s1, 4  ;;  %s1597_s2 = int_to_ptr.hbm [resolvable:$true] %s1596_s2 }
 0x466   : > { %p1603_p12 = scmp.lt.s32.totalorder %s1597_s2, %s2015_s9 }
 0x475   : > { %v856_v11 = vpop.f32.mrf.mxu2 }
 0x476   : > { %860 = vrot.lane.b32.xlu0 %v856_v11, %s1674_s7  ;;  %s1598_s7 = scalar_lea.hbm %s1597_s2, 8 }
 0x477   : > { %p1599_p1 = scmp.ne.s32.totalorder %s1597_s2, %s1598_s7  ;;  %p1604_p7 = scmp.lt.s32.totalorder %s1602_s19, %s1598_s7 }
 0x478   : > { %v719_v16 = vpop.permute.xlu1 %718 }
 0x479   : > { %p1600_p3 = pnand %p1599_p1, %p1816_p4  ;;  %p1605_p8 = por %p1604_p7, %p1603_p12 }
 0x47b   : > { %p1601_p5 = pneg %p1600_p3 }
 0x47c   : > { %v927_v12 = vpop.f32.mrf.mxu0 }
 0x47d   : > { %931 = vrot.lane.b32.xlu1 %v927_v12, %s1675_s17  ;;  %p1606_p9 = pnand %p1605_p8, %p1601_p5 }
 0x4a2   : > { %v1069_v13 = vpop.f32.mrf.mxu0 }
 0x4a3   : > { %v998_v14 = vpop.f32.mrf.mxu2  ;;  %1073 = vrot.lane.b32.xlu1 %v1069_v13, %s1676_s23 }
 0x4a4   : > { %1002 = vrot.lane.b32.xlu2 %v998_v14, %s1677_s28 }
 0x4b7   : > { %v648_v15 = vpop.permute.xlu2 %647 }
 0x4b8   : > { %651 = vst.msk [vmem:[#allocation3] sm:$0xff] %vm650_vm2, %v648_v15 }
 0x4b9   : > { %722 = vst.msk [vmem:[#allocation3] sm:$0xff] %vm721_vm3, %v719_v16 }
 0x4d7   : > { %v790_v17 = vpop.permute.xlu1 %789 }
 0x4d8   : > { %793 = vst.msk [vmem:[#allocation3] sm:$0xff] %vm792_vm4, %v790_v17 }
 0x4e8   : > { %v861_v22 = vpop.permute.xlu0 %860 }
 0x4e9   : > { %864 = vst.msk [vmem:[#allocation3] sm:$0xff] %vm863_vm5, %v861_v22 }
 0x4ef   : > { %v932_v23 = vpop.permute.xlu1 %931 }
 0x4f0   : > { %935 = vst.msk [vmem:[#allocation3] sm:$0xff] %vm934_vm6, %v932_v23 }
 0x4fe   : > { %v1003_v28 = vpop.permute.xlu2 %1002 }
 0x4ff   : > { %1006 = vst.msk [vmem:[#allocation3] sm:$0xff] %vm1005_vm7, %v1003_v28 }
 0x515   : > { %v1074_v30 = vpop.permute.xlu1 %1073 }
 0x516   : > { %1077 = vst.msk [vmem:[#allocation3] sm:$0xff] %vm1076_vm8, %v1074_v30 }
 0x51d   : > { %v1079_v31 = vld [vmem:[#allocation3] sm:$0xff] }
 0x51e   : > { %1287 = vmatmul.msk.f32.vlgmr.msrb.gmra.mxu1 %vm417_vm0, %v1079_v31 }
 0x59b   : > { %v1108_v34 = vpop.f32.mrf.mxu1 }
 0x59c   : > { %v1111_v35 = vadd.f32 %v1108_v34, %v1078_v32 }
 0x59e   : > { %1112 = vst.msk [vmem:[#allocation2] sm:$0xff] %vm417_vm0, %v1111_v35 }
 0x5a5   : > { %v1113_v37 = vld [vmem:[#allocation2] sm:$0xff] }
 0x5a6   : > { %v1118_v38 = vadd.f32 %v1399_v36, %v1113_v37 }
 0x5a8   : > { %1119 = vst.msk [vmem:[%s415_s27] sm:$0xff] %vm417_vm0, %v1118_v38 }
 0x5a9   : > { %1609 = shalt.err (!%p1606_p9)
}
 0x5aa   : > { %1310 = dma.vmem_to_hbm [thread:$0]  (%p1816_p4), %s1134_s3, 128, %s1136_s1, %s1121_s16  }
 0x5ab PF: > { %s1147_s29 = sand.u32 1, %s1644_s30   ;;  %p2031_p10 = scmp.ge.s32.totalorder %s1656_s12, 2 }
 0x5ac   : > { %s1148_s20 = scalar_lea.sflag [#allocation6], %s1147_s29 }
 0x5ad   : > { %p1330_p13 = pnand %p2031_p10, %p1820_p6 }
 0x5af   : > { %p1331_p11 = pneg %p1330_p13 }
 0x5b1   : > { %1639 = dma.done.wait (%p1331_p11), %s1148_s20, 128  }
 0x5b2   : > { %1641 = vsyncadd (%p1331_p11), %s1148_s20, 4294967168  ;;  %p24_p0 = scmp.ge.s32.totalorder %s1790_s25, 4   ;;  %s2032_s30 = smov %s1648_s10 }
 0x5b3   : > { %s2033_s10 = smov %s1652_s11  ;;  %s2034_s11 = smov %s1801_s26 }
 0x5b4   : > { %s2035_s12 = smov %s1790_s25  ;;  %26 = sbr.rel (!%p24_p0) target bundleno = 12 (0xc), region = 117 }
 0x5b9   :  { %1154 = vsyncpa [#allocation5], 1 }
 0x5ba   :  { %1156 = vsyncpa [#allocation5 + $0x1], 1 }
 0x5bb   :  { %1157 = vsyncpa [#allocation8], 1 }
 0x5bc   :  { %1158 = vsyncpa [#allocation11], 1 }
 0x5bd   :  { %1159 = vsyncpa [#allocation6], 1 }
 0x5be   :  { %1161 = vsyncpa [#allocation6 + $0x1], 1 }

</bundles_post_ra>
